<compile_context>
chip_gen: v7x
topology: tpu7x:2x2x1
jax: 0.10.0
libtpu: 0.0.40
codegen_flags: <defaults>
</compile_context>

<pallas_src>
import jax
import jax.numpy as jnp
import numpy as np
from jax.experimental import pallas as pl
from jax.experimental.pallas import tpu as pltpu


# ---------------------------------------------------------------------------
# Fused kernel: TextSubNet(seqs) + TextSubNet(quas) + low-rank fusion
# ---------------------------------------------------------------------------
def lmf_fused_kernel(sx_ref, s_wih_ref, s_whh_ref, s_b_ref, s_wl_ref, s_bl_ref,
                     qx_ref, q_wih_ref, q_whh_ref, q_b_ref, q_wl_ref, q_bl_ref,
                     sf_ref, sfb_ref, qf_ref, qfb_ref, fb_ref,
                     out_ref):
    B, O = out_ref.shape
    RO = sf_ref.shape[1]
    R = RO // O

    def subnet(x_ref, wih_ref, whh_ref, b_ref, wl_ref, bl_ref):
        # x_ref: (S*B, D) time-major-flattened input.
        H = whh_ref.shape[0]
        S = x_ref.shape[0] // B
        # Hoisted input projection: one MXU call covering every time step.
        gx = (jnp.dot(x_ref[...], wih_ref[...],
                      preferred_element_type=jnp.float32)
              + b_ref[...])                                  # (S*B, 4H)
        h = jnp.zeros((B, H), jnp.float32)
        c = jnp.zeros((B, H), jnp.float32)
        # Statically unrolled recurrence (S is small); only h @ W_hh remains
        # on the critical path.
        for t in range(S):
            gates = gx[t * B:(t + 1) * B, :] + jnp.dot(
                h, whh_ref[...], preferred_element_type=jnp.float32)
            i = jax.nn.sigmoid(gates[:, 0:H])
            f = jax.nn.sigmoid(gates[:, H:2 * H])
            g = jnp.tanh(gates[:, 2 * H:3 * H])
            o = jax.nn.sigmoid(gates[:, 3 * H:4 * H])
            c = f * c + i * g
            h = o * jnp.tanh(c)
        # dropout = identity (inference); linear_1 applies (hidden == out_size).
        return (jnp.dot(h, wl_ref[...], preferred_element_type=jnp.float32)
                + bl_ref[...])                               # (B, text_out)

    sh = subnet(sx_ref, s_wih_ref, s_whh_ref, s_b_ref, s_wl_ref, s_bl_ref)
    qh = subnet(qx_ref, q_wih_ref, q_whh_ref, q_b_ref, q_wl_ref, q_bl_ref)

    # LMF fusion. Factors are laid out (text_out, rank*O); the constant ones
    # column is folded into the additive bias rows sfb/qfb; the seqs-side
    # factor is already scaled by fusion_weights, so the rank reduction is a
    # plain sum.
    fa = jnp.dot(sh, sf_ref[...], preferred_element_type=jnp.float32) + sfb_ref[...]
    fv = jnp.dot(qh, qf_ref[...], preferred_element_type=jnp.float32) + qfb_ref[...]
    zy = fa * fv                                             # (B, R*O)

    out = fb_ref[...] + zy[:, 0:O]
    for r in range(1, R):
        out = out + zy[:, r * O:(r + 1) * O]
    out_ref[...] = out
    # TODO(synk): use_softmax=False path only; softmax head not included.


def lmf_forward(seqs_x, quas_x, seqs_params, quas_params,
                seqs_factor, quas_factor, fusion_weights, fusion_bias):
    """seqs_x/quas_x: (B, S, D_in) -> (B, output_dim)."""
    B, S, Ds = seqs_x.shape
    Dq = quas_x.shape[-1]
    R, T1, O = seqs_factor.shape

    # Time-major, flattened so the in-kernel input projection is ONE matmul.
    sx = jnp.transpose(seqs_x, (1, 0, 2)).reshape(S * B, Ds)
    qx = jnp.transpose(quas_x, (1, 0, 2)).reshape(S * B, Dq)

    # Factor layout prep (cheap one-time weight plumbing, done outside the
    # kernel): (R, T+1, O) -> (T+1, R*O); pre-scale the seqs side by the
    # fusion weights; split off the ones-column row as an additive bias.
    sf2 = jnp.transpose(seqs_factor, (1, 0, 2)).reshape(T1, R * O)
    qf2 = jnp.transpose(quas_factor, (1, 0, 2)).reshape(T1, R * O)
    fw_rep = jnp.repeat(fusion_weights[0], O)                # (R*O,)
    sf2 = sf2 * fw_rep[None, :]
    sf_main, sf_bias = sf2[1:], sf2[0:1]
    qf_main, qf_bias = qf2[1:], qf2[0:1]

    vmem = pl.BlockSpec(memory_space=pltpu.MemorySpace.VMEM)
    n_in = 17
    return pl.pallas_call(
        lmf_fused_kernel,
        out_shape=jax.ShapeDtypeStruct((B, O), jnp.float32),
        in_specs=[vmem] * n_in,
        out_specs=vmem,
    )(sx, *seqs_params, qx, *quas_params,
      sf_main, sf_bias, qf_main, qf_bias, fusion_bias)


# ---------------------------------------------------------------------------
# Pure-JAX reference (for correctness check)
# ---------------------------------------------------------------------------
def text_subnet_ref(x, params):
    wih_t, whh_t, b, wl_t, bl = params
    B = x.shape[0]
    H = whh_t.shape[0]

    def step(carry, x_t):
        h, c = carry
        gates = x_t @ wih_t + h @ whh_t + b[0]
        i, f, g, o = jnp.split(gates, 4, axis=-1)
        c = jax.nn.sigmoid(f) * c + jax.nn.sigmoid(i) * jnp.tanh(g)
        h = jax.nn.sigmoid(o) * jnp.tanh(c)
        return (h, c), None

    h0 = jnp.zeros((B, H), jnp.float32)
    (h, _), _ = jax.lax.scan(step, (h0, h0), jnp.transpose(x, (1, 0, 2)))
    return h @ wl_t + bl


def lmf_ref(seqs_x, quas_x, sp, qp, sf, qf, fw, fb):
    sh = text_subnet_ref(seqs_x, sp)
    qh = text_subnet_ref(quas_x, qp)
    B = sh.shape[0]
    ones = jnp.ones((B, 1), jnp.float32)
    _sh = jnp.concatenate([ones, sh], axis=1)
    _qh = jnp.concatenate([ones, qh], axis=1)
    fa = jnp.einsum('bt,rto->rbo', _sh, sf)
    fv = jnp.einsum('bt,rto->rbo', _qh, qf)
    zy = fa * fv
    return jnp.einsum('r,rbo->bo', fw[0], zy) + fb


# ---------------------------------------------------------------------------
if __name__ == "__main__":
    key = jax.random.PRNGKey(0)
    B, S = 2, 8
    seqs_in, quas_in = 16, 12
    hidden = text_out = 32          # hidden == text_out so linear_1 is applied
    output_dim = 8
    rank = 4

    ks = jax.random.split(key, 16)

    def nrm(k, shape, scale):
        return (scale * jax.random.normal(k, shape)).astype(jnp.float32)

    # xavier-normal-flavoured deterministic init (synthetic weights)
    def subnet_params(kset, in_dim):
        return (
            nrm(kset[0], (in_dim, 4 * hidden), (2.0 / (in_dim + 4 * hidden)) ** 0.5),
            nrm(kset[1], (hidden, 4 * hidden), (2.0 / (hidden + 4 * hidden)) ** 0.5),
            nrm(kset[2], (1, 4 * hidden), 0.05),
            nrm(kset[3], (hidden, text_out), (2.0 / (hidden + text_out)) ** 0.5),
            nrm(kset[4], (1, text_out), 0.05),
        )

    seqs_params = subnet_params(ks[0:5], seqs_in)
    quas_params = subnet_params(ks[5:10], quas_in)
    seqs_factor = nrm(ks[10], (rank, text_out + 1, output_dim),
                      (2.0 / (text_out + 1 + output_dim)) ** 0.5)
    quas_factor = nrm(ks[11], (rank, text_out + 1, output_dim),
                      (2.0 / (text_out + 1 + output_dim)) ** 0.5)
    fusion_weights = nrm(ks[12], (1, rank), (2.0 / (1 + rank)) ** 0.5)
    fusion_bias = jnp.zeros((1, output_dim), jnp.float32)

    seqs_x = jax.random.normal(ks[13], (B, S, seqs_in), jnp.float32)
    quas_x = jax.random.normal(ks[14], (B, S, quas_in), jnp.float32)

    out = lmf_forward(seqs_x, quas_x, seqs_params, quas_params,
                      seqs_factor, quas_factor, fusion_weights, fusion_bias)
    out = jax.block_until_ready(out)

    ref = lmf_ref(seqs_x, quas_x, seqs_params, quas_params,
                  seqs_factor, quas_factor, fusion_weights, fusion_bias)
    ref = jax.block_until_ready(ref)

    assert out.shape == (B, output_dim)
    assert np.allclose(np.asarray(out), np.asarray(ref), rtol=1e-4, atol=1e-4), (
        np.max(np.abs(np.asarray(out) - np.asarray(ref))))
    print("KERNEL_OK")
</pallas_src>

<mosaic_0001>
module attributes {stable_mosaic.version = 11 : i64} {
  func.func @lmf_fused_kernel(%arg0: memref<16x16xf32, #tpu.memory_space<vmem>>, %arg1: memref<16x128xf32, #tpu.memory_space<vmem>>, %arg2: memref<32x128xf32, #tpu.memory_space<vmem>>, %arg3: memref<1x128xf32, #tpu.memory_space<vmem>>, %arg4: memref<32x32xf32, #tpu.memory_space<vmem>>, %arg5: memref<1x32xf32, #tpu.memory_space<vmem>>, %arg6: memref<16x12xf32, #tpu.memory_space<vmem>>, %arg7: memref<12x128xf32, #tpu.memory_space<vmem>>, %arg8: memref<32x128xf32, #tpu.memory_space<vmem>>, %arg9: memref<1x128xf32, #tpu.memory_space<vmem>>, %arg10: memref<32x32xf32, #tpu.memory_space<vmem>>, %arg11: memref<1x32xf32, #tpu.memory_space<vmem>>, %arg12: memref<32x32xf32, #tpu.memory_space<vmem>>, %arg13: memref<1x32xf32, #tpu.memory_space<vmem>>, %arg14: memref<32x32xf32, #tpu.memory_space<vmem>>, %arg15: memref<1x32xf32, #tpu.memory_space<vmem>>, %arg16: memref<1x8xf32, #tpu.memory_space<vmem>>, %arg17: memref<2x8xf32, #tpu.memory_space<vmem>>) attributes {dimension_semantics = [], scalar_prefetch = 0 : i64, scratch_operands = 0 : i64, tpu.core_type = #tpu.core_type<tc>} {
    %c0 = arith.constant 0 : index
    %c0_0 = arith.constant 0 : index
    %0 = vector.load %arg0[%c0, %c0_0] : memref<16x16xf32, #tpu.memory_space<vmem>>, vector<16x16xf32>
    %c0_1 = arith.constant 0 : index
    %c0_2 = arith.constant 0 : index
    %1 = vector.load %arg1[%c0_1, %c0_2] : memref<16x128xf32, #tpu.memory_space<vmem>>, vector<16x128xf32>
    %cst = arith.constant dense<0.000000e+00> : vector<16x128xf32>
    %2 = tpu.matmul %0, %1, %cst {dimension_numbers = #tpu.dot_dimension_numbers<[1], [0], [0], [1], [0, 0, 1, 1], [], []>} : vector<16x16xf32>, vector<16x128xf32>, vector<16x128xf32> -> vector<16x128xf32>
    %c0_3 = arith.constant 0 : index
    %c0_4 = arith.constant 0 : index
    %3 = vector.load %arg3[%c0_3, %c0_4] : memref<1x128xf32, #tpu.memory_space<vmem>>, vector<1x128xf32>
    %4 = vector.broadcast %3 : vector<1x128xf32> to vector<16x128xf32>
    %5 = arith.addf %2, %4 : vector<16x128xf32>
    %cst_5 = arith.constant 0.000000e+00 : f32
    %6 = vector.broadcast %cst_5 : f32 to vector<2x32xf32>
    %cst_6 = arith.constant 0.000000e+00 : f32
    %7 = vector.broadcast %cst_6 : f32 to vector<2x32xf32>
    %8 = vector.extract_strided_slice %5 {offsets = [0, 0], sizes = [2, 128], strides = [1, 1]} : vector<16x128xf32> to vector<2x128xf32>
    %c0_7 = arith.constant 0 : index
    %c0_8 = arith.constant 0 : index
    %9 = vector.load %arg2[%c0_7, %c0_8] : memref<32x128xf32, #tpu.memory_space<vmem>>, vector<32x128xf32>
    %cst_9 = arith.constant dense<0.000000e+00> : vector<2x128xf32>
    %10 = tpu.matmul %6, %9, %cst_9 {dimension_numbers = #tpu.dot_dimension_numbers<[1], [0], [0], [1], [0, 0, 1, 1], [], []>} : vector<2x32xf32>, vector<32x128xf32>, vector<2x128xf32> -> vector<2x128xf32>
    %11 = arith.addf %8, %10 : vector<2x128xf32>
    %12 = vector.extract_strided_slice %11 {offsets = [0, 0], sizes = [2, 32], strides = [1, 1]} : vector<2x128xf32> to vector<2x32xf32>
    %13 = arith.negf %12 : vector<2x32xf32>
    %14 = math.exp %13 : vector<2x32xf32>
    %cst_10 = arith.constant 1.000000e+00 : f32
    %15 = vector.broadcast %cst_10 : f32 to vector<2x32xf32>
    %16 = arith.addf %15, %14 : vector<2x32xf32>
    %17 = arith.divf %15, %16 : vector<2x32xf32>
    %18 = vector.extract_strided_slice %11 {offsets = [0, 32], sizes = [2, 32], strides = [1, 1]} : vector<2x128xf32> to vector<2x32xf32>
    %19 = arith.negf %18 : vector<2x32xf32>
    %20 = math.exp %19 : vector<2x32xf32>
    %cst_11 = arith.constant 1.000000e+00 : f32
    %21 = vector.broadcast %cst_11 : f32 to vector<2x32xf32>
    %22 = arith.addf %21, %20 : vector<2x32xf32>
    %23 = arith.divf %21, %22 : vector<2x32xf32>
    %24 = vector.extract_strided_slice %11 {offsets = [0, 64], sizes = [2, 32], strides = [1, 1]} : vector<2x128xf32> to vector<2x32xf32>
    %25 = math.tanh %24 : vector<2x32xf32>
    %26 = vector.extract_strided_slice %11 {offsets = [0, 96], sizes = [2, 32], strides = [1, 1]} : vector<2x128xf32> to vector<2x32xf32>
    %27 = arith.negf %26 : vector<2x32xf32>
    %28 = math.exp %27 : vector<2x32xf32>
    %cst_12 = arith.constant 1.000000e+00 : f32
    %29 = vector.broadcast %cst_12 : f32 to vector<2x32xf32>
    %30 = arith.addf %29, %28 : vector<2x32xf32>
    %31 = arith.divf %29, %30 : vector<2x32xf32>
    %32 = arith.mulf %23, %7 : vector<2x32xf32>
    %33 = arith.mulf %17, %25 : vector<2x32xf32>
    %34 = arith.addf %32, %33 : vector<2x32xf32>
    %35 = math.tanh %34 : vector<2x32xf32>
    %36 = arith.mulf %31, %35 : vector<2x32xf32>
    %37 = vector.extract_strided_slice %5 {offsets = [2, 0], sizes = [2, 128], strides = [1, 1]} : vector<16x128xf32> to vector<2x128xf32>
    %c0_13 = arith.constant 0 : index
    %c0_14 = arith.constant 0 : index
    %38 = vector.load %arg2[%c0_13, %c0_14] : memref<32x128xf32, #tpu.memory_space<vmem>>, vector<32x128xf32>
    %cst_15 = arith.constant dense<0.000000e+00> : vector<2x128xf32>
    %39 = tpu.matmul %36, %38, %cst_15 {dimension_numbers = #tpu.dot_dimension_numbers<[1], [0], [0], [1], [0, 0, 1, 1], [], []>} : vector<2x32xf32>, vector<32x128xf32>, vector<2x128xf32> -> vector<2x128xf32>
    %40 = arith.addf %37, %39 : vector<2x128xf32>
    %41 = vector.extract_strided_slice %40 {offsets = [0, 0], sizes = [2, 32], strides = [1, 1]} : vector<2x128xf32> to vector<2x32xf32>
    %42 = arith.negf %41 : vector<2x32xf32>
    %43 = math.exp %42 : vector<2x32xf32>
    %cst_16 = arith.constant 1.000000e+00 : f32
    %44 = vector.broadcast %cst_16 : f32 to vector<2x32xf32>
    %45 = arith.addf %44, %43 : vector<2x32xf32>
    %46 = arith.divf %44, %45 : vector<2x32xf32>
    %47 = vector.extract_strided_slice %40 {offsets = [0, 32], sizes = [2, 32], strides = [1, 1]} : vector<2x128xf32> to vector<2x32xf32>
    %48 = arith.negf %47 : vector<2x32xf32>
    %49 = math.exp %48 : vector<2x32xf32>
    %cst_17 = arith.constant 1.000000e+00 : f32
    %50 = vector.broadcast %cst_17 : f32 to vector<2x32xf32>
    %51 = arith.addf %50, %49 : vector<2x32xf32>
    %52 = arith.divf %50, %51 : vector<2x32xf32>
    %53 = vector.extract_strided_slice %40 {offsets = [0, 64], sizes = [2, 32], strides = [1, 1]} : vector<2x128xf32> to vector<2x32xf32>
    %54 = math.tanh %53 : vector<2x32xf32>
    %55 = vector.extract_strided_slice %40 {offsets = [0, 96], sizes = [2, 32], strides = [1, 1]} : vector<2x128xf32> to vector<2x32xf32>
    %56 = arith.negf %55 : vector<2x32xf32>
    %57 = math.exp %56 : vector<2x32xf32>
    %cst_18 = arith.constant 1.000000e+00 : f32
    %58 = vector.broadcast %cst_18 : f32 to vector<2x32xf32>
    %59 = arith.addf %58, %57 : vector<2x32xf32>
    %60 = arith.divf %58, %59 : vector<2x32xf32>
    %61 = arith.mulf %52, %34 : vector<2x32xf32>
    %62 = arith.mulf %46, %54 : vector<2x32xf32>
    %63 = arith.addf %61, %62 : vector<2x32xf32>
    %64 = math.tanh %63 : vector<2x32xf32>
    %65 = arith.mulf %60, %64 : vector<2x32xf32>
    %66 = vector.extract_strided_slice %5 {offsets = [4, 0], sizes = [2, 128], strides = [1, 1]} : vector<16x128xf32> to vector<2x128xf32>
    %c0_19 = arith.constant 0 : index
    %c0_20 = arith.constant 0 : index
    %67 = vector.load %arg2[%c0_19, %c0_20] : memref<32x128xf32, #tpu.memory_space<vmem>>, vector<32x128xf32>
    %cst_21 = arith.constant dense<0.000000e+00> : vector<2x128xf32>
    %68 = tpu.matmul %65, %67, %cst_21 {dimension_numbers = #tpu.dot_dimension_numbers<[1], [0], [0], [1], [0, 0, 1, 1], [], []>} : vector<2x32xf32>, vector<32x128xf32>, vector<2x128xf32> -> vector<2x128xf32>
    %69 = arith.addf %66, %68 : vector<2x128xf32>
    %70 = vector.extract_strided_slice %69 {offsets = [0, 0], sizes = [2, 32], strides = [1, 1]} : vector<2x128xf32> to vector<2x32xf32>
    %71 = arith.negf %70 : vector<2x32xf32>
    %72 = math.exp %71 : vector<2x32xf32>
    %cst_22 = arith.constant 1.000000e+00 : f32
    %73 = vector.broadcast %cst_22 : f32 to vector<2x32xf32>
    %74 = arith.addf %73, %72 : vector<2x32xf32>
    %75 = arith.divf %73, %74 : vector<2x32xf32>
    %76 = vector.extract_strided_slice %69 {offsets = [0, 32], sizes = [2, 32], strides = [1, 1]} : vector<2x128xf32> to vector<2x32xf32>
    %77 = arith.negf %76 : vector<2x32xf32>
    %78 = math.exp %77 : vector<2x32xf32>
    %cst_23 = arith.constant 1.000000e+00 : f32
    %79 = vector.broadcast %cst_23 : f32 to vector<2x32xf32>
    %80 = arith.addf %79, %78 : vector<2x32xf32>
    %81 = arith.divf %79, %80 : vector<2x32xf32>
    %82 = vector.extract_strided_slice %69 {offsets = [0, 64], sizes = [2, 32], strides = [1, 1]} : vector<2x128xf32> to vector<2x32xf32>
    %83 = math.tanh %82 : vector<2x32xf32>
    %84 = vector.extract_strided_slice %69 {offsets = [0, 96], sizes = [2, 32], strides = [1, 1]} : vector<2x128xf32> to vector<2x32xf32>
    %85 = arith.negf %84 : vector<2x32xf32>
    %86 = math.exp %85 : vector<2x32xf32>
    %cst_24 = arith.constant 1.000000e+00 : f32
    %87 = vector.broadcast %cst_24 : f32 to vector<2x32xf32>
    %88 = arith.addf %87, %86 : vector<2x32xf32>
    %89 = arith.divf %87, %88 : vector<2x32xf32>
    %90 = arith.mulf %81, %63 : vector<2x32xf32>
    %91 = arith.mulf %75, %83 : vector<2x32xf32>
    %92 = arith.addf %90, %91 : vector<2x32xf32>
    %93 = math.tanh %92 : vector<2x32xf32>
    %94 = arith.mulf %89, %93 : vector<2x32xf32>
    %95 = vector.extract_strided_slice %5 {offsets = [6, 0], sizes = [2, 128], strides = [1, 1]} : vector<16x128xf32> to vector<2x128xf32>
    %c0_25 = arith.constant 0 : index
    %c0_26 = arith.constant 0 : index
    %96 = vector.load %arg2[%c0_25, %c0_26] : memref<32x128xf32, #tpu.memory_space<vmem>>, vector<32x128xf32>
    %cst_27 = arith.constant dense<0.000000e+00> : vector<2x128xf32>
    %97 = tpu.matmul %94, %96, %cst_27 {dimension_numbers = #tpu.dot_dimension_numbers<[1], [0], [0], [1], [0, 0, 1, 1], [], []>} : vector<2x32xf32>, vector<32x128xf32>, vector<2x128xf32> -> vector<2x128xf32>
    %98 = arith.addf %95, %97 : vector<2x128xf32>
    %99 = vector.extract_strided_slice %98 {offsets = [0, 0], sizes = [2, 32], strides = [1, 1]} : vector<2x128xf32> to vector<2x32xf32>
    %100 = arith.negf %99 : vector<2x32xf32>
    %101 = math.exp %100 : vector<2x32xf32>
    %cst_28 = arith.constant 1.000000e+00 : f32
    %102 = vector.broadcast %cst_28 : f32 to vector<2x32xf32>
    %103 = arith.addf %102, %101 : vector<2x32xf32>
    %104 = arith.divf %102, %103 : vector<2x32xf32>
    %105 = vector.extract_strided_slice %98 {offsets = [0, 32], sizes = [2, 32], strides = [1, 1]} : vector<2x128xf32> to vector<2x32xf32>
    %106 = arith.negf %105 : vector<2x32xf32>
    %107 = math.exp %106 : vector<2x32xf32>
    %cst_29 = arith.constant 1.000000e+00 : f32
    %108 = vector.broadcast %cst_29 : f32 to vector<2x32xf32>
    %109 = arith.addf %108, %107 : vector<2x32xf32>
    %110 = arith.divf %108, %109 : vector<2x32xf32>
    %111 = vector.extract_strided_slice %98 {offsets = [0, 64], sizes = [2, 32], strides = [1, 1]} : vector<2x128xf32> to vector<2x32xf32>
    %112 = math.tanh %111 : vector<2x32xf32>
    %113 = vector.extract_strided_slice %98 {offsets = [0, 96], sizes = [2, 32], strides = [1, 1]} : vector<2x128xf32> to vector<2x32xf32>
    %114 = arith.negf %113 : vector<2x32xf32>
    %115 = math.exp %114 : vector<2x32xf32>
    %cst_30 = arith.constant 1.000000e+00 : f32
    %116 = vector.broadcast %cst_30 : f32 to vector<2x32xf32>
    %117 = arith.addf %116, %115 : vector<2x32xf32>
    %118 = arith.divf %116, %117 : vector<2x32xf32>
    %119 = arith.mulf %110, %92 : vector<2x32xf32>
    %120 = arith.mulf %104, %112 : vector<2x32xf32>
    %121 = arith.addf %119, %120 : vector<2x32xf32>
    %122 = math.tanh %121 : vector<2x32xf32>
    %123 = arith.mulf %118, %122 : vector<2x32xf32>
    %124 = vector.extract_strided_slice %5 {offsets = [8, 0], sizes = [2, 128], strides = [1, 1]} : vector<16x128xf32> to vector<2x128xf32>
    %c0_31 = arith.constant 0 : index
    %c0_32 = arith.constant 0 : index
    %125 = vector.load %arg2[%c0_31, %c0_32] : memref<32x128xf32, #tpu.memory_space<vmem>>, vector<32x128xf32>
    %cst_33 = arith.constant dense<0.000000e+00> : vector<2x128xf32>
    %126 = tpu.matmul %123, %125, %cst_33 {dimension_numbers = #tpu.dot_dimension_numbers<[1], [0], [0], [1], [0, 0, 1, 1], [], []>} : vector<2x32xf32>, vector<32x128xf32>, vector<2x128xf32> -> vector<2x128xf32>
    %127 = arith.addf %124, %126 : vector<2x128xf32>
    %128 = vector.extract_strided_slice %127 {offsets = [0, 0], sizes = [2, 32], strides = [1, 1]} : vector<2x128xf32> to vector<2x32xf32>
    %129 = arith.negf %128 : vector<2x32xf32>
    %130 = math.exp %129 : vector<2x32xf32>
    %cst_34 = arith.constant 1.000000e+00 : f32
    %131 = vector.broadcast %cst_34 : f32 to vector<2x32xf32>
    %132 = arith.addf %131, %130 : vector<2x32xf32>
    %133 = arith.divf %131, %132 : vector<2x32xf32>
    %134 = vector.extract_strided_slice %127 {offsets = [0, 32], sizes = [2, 32], strides = [1, 1]} : vector<2x128xf32> to vector<2x32xf32>
    %135 = arith.negf %134 : vector<2x32xf32>
    %136 = math.exp %135 : vector<2x32xf32>
    %cst_35 = arith.constant 1.000000e+00 : f32
    %137 = vector.broadcast %cst_35 : f32 to vector<2x32xf32>
    %138 = arith.addf %137, %136 : vector<2x32xf32>
    %139 = arith.divf %137, %138 : vector<2x32xf32>
    %140 = vector.extract_strided_slice %127 {offsets = [0, 64], sizes = [2, 32], strides = [1, 1]} : vector<2x128xf32> to vector<2x32xf32>
    %141 = math.tanh %140 : vector<2x32xf32>
    %142 = vector.extract_strided_slice %127 {offsets = [0, 96], sizes = [2, 32], strides = [1, 1]} : vector<2x128xf32> to vector<2x32xf32>
    %143 = arith.negf %142 : vector<2x32xf32>
    %144 = math.exp %143 : vector<2x32xf32>
    %cst_36 = arith.constant 1.000000e+00 : f32
    %145 = vector.broadcast %cst_36 : f32 to vector<2x32xf32>
    %146 = arith.addf %145, %144 : vector<2x32xf32>
    %147 = arith.divf %145, %146 : vector<2x32xf32>
    %148 = arith.mulf %139, %121 : vector<2x32xf32>
    %149 = arith.mulf %133, %141 : vector<2x32xf32>
    %150 = arith.addf %148, %149 : vector<2x32xf32>
    %151 = math.tanh %150 : vector<2x32xf32>
    %152 = arith.mulf %147, %151 : vector<2x32xf32>
    %153 = vector.extract_strided_slice %5 {offsets = [10, 0], sizes = [2, 128], strides = [1, 1]} : vector<16x128xf32> to vector<2x128xf32>
    %c0_37 = arith.constant 0 : index
    %c0_38 = arith.constant 0 : index
    %154 = vector.load %arg2[%c0_37, %c0_38] : memref<32x128xf32, #tpu.memory_space<vmem>>, vector<32x128xf32>
    %cst_39 = arith.constant dense<0.000000e+00> : vector<2x128xf32>
    %155 = tpu.matmul %152, %154, %cst_39 {dimension_numbers = #tpu.dot_dimension_numbers<[1], [0], [0], [1], [0, 0, 1, 1], [], []>} : vector<2x32xf32>, vector<32x128xf32>, vector<2x128xf32> -> vector<2x128xf32>
    %156 = arith.addf %153, %155 : vector<2x128xf32>
    %157 = vector.extract_strided_slice %156 {offsets = [0, 0], sizes = [2, 32], strides = [1, 1]} : vector<2x128xf32> to vector<2x32xf32>
    %158 = arith.negf %157 : vector<2x32xf32>
    %159 = math.exp %158 : vector<2x32xf32>
    %cst_40 = arith.constant 1.000000e+00 : f32
    %160 = vector.broadcast %cst_40 : f32 to vector<2x32xf32>
    %161 = arith.addf %160, %159 : vector<2x32xf32>
    %162 = arith.divf %160, %161 : vector<2x32xf32>
    %163 = vector.extract_strided_slice %156 {offsets = [0, 32], sizes = [2, 32], strides = [1, 1]} : vector<2x128xf32> to vector<2x32xf32>
    %164 = arith.negf %163 : vector<2x32xf32>
    %165 = math.exp %164 : vector<2x32xf32>
    %cst_41 = arith.constant 1.000000e+00 : f32
    %166 = vector.broadcast %cst_41 : f32 to vector<2x32xf32>
    %167 = arith.addf %166, %165 : vector<2x32xf32>
    %168 = arith.divf %166, %167 : vector<2x32xf32>
    %169 = vector.extract_strided_slice %156 {offsets = [0, 64], sizes = [2, 32], strides = [1, 1]} : vector<2x128xf32> to vector<2x32xf32>
    %170 = math.tanh %169 : vector<2x32xf32>
    %171 = vector.extract_strided_slice %156 {offsets = [0, 96], sizes = [2, 32], strides = [1, 1]} : vector<2x128xf32> to vector<2x32xf32>
    %172 = arith.negf %171 : vector<2x32xf32>
    %173 = math.exp %172 : vector<2x32xf32>
    %cst_42 = arith.constant 1.000000e+00 : f32
    %174 = vector.broadcast %cst_42 : f32 to vector<2x32xf32>
    %175 = arith.addf %174, %173 : vector<2x32xf32>
    %176 = arith.divf %174, %175 : vector<2x32xf32>
    %177 = arith.mulf %168, %150 : vector<2x32xf32>
    %178 = arith.mulf %162, %170 : vector<2x32xf32>
    %179 = arith.addf %177, %178 : vector<2x32xf32>
    %180 = math.tanh %179 : vector<2x32xf32>
    %181 = arith.mulf %176, %180 : vector<2x32xf32>
    %182 = vector.extract_strided_slice %5 {offsets = [12, 0], sizes = [2, 128], strides = [1, 1]} : vector<16x128xf32> to vector<2x128xf32>
    %c0_43 = arith.constant 0 : index
    %c0_44 = arith.constant 0 : index
    %183 = vector.load %arg2[%c0_43, %c0_44] : memref<32x128xf32, #tpu.memory_space<vmem>>, vector<32x128xf32>
    %cst_45 = arith.constant dense<0.000000e+00> : vector<2x128xf32>
    %184 = tpu.matmul %181, %183, %cst_45 {dimension_numbers = #tpu.dot_dimension_numbers<[1], [0], [0], [1], [0, 0, 1, 1], [], []>} : vector<2x32xf32>, vector<32x128xf32>, vector<2x128xf32> -> vector<2x128xf32>
    %185 = arith.addf %182, %184 : vector<2x128xf32>
    %186 = vector.extract_strided_slice %185 {offsets = [0, 0], sizes = [2, 32], strides = [1, 1]} : vector<2x128xf32> to vector<2x32xf32>
    %187 = arith.negf %186 : vector<2x32xf32>
    %188 = math.exp %187 : vector<2x32xf32>
    %cst_46 = arith.constant 1.000000e+00 : f32
    %189 = vector.broadcast %cst_46 : f32 to vector<2x32xf32>
    %190 = arith.addf %189, %188 : vector<2x32xf32>
    %191 = arith.divf %189, %190 : vector<2x32xf32>
    %192 = vector.extract_strided_slice %185 {offsets = [0, 32], sizes = [2, 32], strides = [1, 1]} : vector<2x128xf32> to vector<2x32xf32>
    %193 = arith.negf %192 : vector<2x32xf32>
    %194 = math.exp %193 : vector<2x32xf32>
    %cst_47 = arith.constant 1.000000e+00 : f32
    %195 = vector.broadcast %cst_47 : f32 to vector<2x32xf32>
    %196 = arith.addf %195, %194 : vector<2x32xf32>
    %197 = arith.divf %195, %196 : vector<2x32xf32>
    %198 = vector.extract_strided_slice %185 {offsets = [0, 64], sizes = [2, 32], strides = [1, 1]} : vector<2x128xf32> to vector<2x32xf32>
    %199 = math.tanh %198 : vector<2x32xf32>
    %200 = vector.extract_strided_slice %185 {offsets = [0, 96], sizes = [2, 32], strides = [1, 1]} : vector<2x128xf32> to vector<2x32xf32>
    %201 = arith.negf %200 : vector<2x32xf32>
    %202 = math.exp %201 : vector<2x32xf32>
    %cst_48 = arith.constant 1.000000e+00 : f32
    %203 = vector.broadcast %cst_48 : f32 to vector<2x32xf32>
    %204 = arith.addf %203, %202 : vector<2x32xf32>
    %205 = arith.divf %203, %204 : vector<2x32xf32>
    %206 = arith.mulf %197, %179 : vector<2x32xf32>
    %207 = arith.mulf %191, %199 : vector<2x32xf32>
    %208 = arith.addf %206, %207 : vector<2x32xf32>
    %209 = math.tanh %208 : vector<2x32xf32>
    %210 = arith.mulf %205, %209 : vector<2x32xf32>
    %211 = vector.extract_strided_slice %5 {offsets = [14, 0], sizes = [2, 128], strides = [1, 1]} : vector<16x128xf32> to vector<2x128xf32>
    %c0_49 = arith.constant 0 : index
    %c0_50 = arith.constant 0 : index
    %212 = vector.load %arg2[%c0_49, %c0_50] : memref<32x128xf32, #tpu.memory_space<vmem>>, vector<32x128xf32>
    %cst_51 = arith.constant dense<0.000000e+00> : vector<2x128xf32>
    %213 = tpu.matmul %210, %212, %cst_51 {dimension_numbers = #tpu.dot_dimension_numbers<[1], [0], [0], [1], [0, 0, 1, 1], [], []>} : vector<2x32xf32>, vector<32x128xf32>, vector<2x128xf32> -> vector<2x128xf32>
    %214 = arith.addf %211, %213 : vector<2x128xf32>
    %215 = vector.extract_strided_slice %214 {offsets = [0, 0], sizes = [2, 32], strides = [1, 1]} : vector<2x128xf32> to vector<2x32xf32>
    %216 = arith.negf %215 : vector<2x32xf32>
    %217 = math.exp %216 : vector<2x32xf32>
    %cst_52 = arith.constant 1.000000e+00 : f32
    %218 = vector.broadcast %cst_52 : f32 to vector<2x32xf32>
    %219 = arith.addf %218, %217 : vector<2x32xf32>
    %220 = arith.divf %218, %219 : vector<2x32xf32>
    %221 = vector.extract_strided_slice %214 {offsets = [0, 32], sizes = [2, 32], strides = [1, 1]} : vector<2x128xf32> to vector<2x32xf32>
    %222 = arith.negf %221 : vector<2x32xf32>
    %223 = math.exp %222 : vector<2x32xf32>
    %cst_53 = arith.constant 1.000000e+00 : f32
    %224 = vector.broadcast %cst_53 : f32 to vector<2x32xf32>
    %225 = arith.addf %224, %223 : vector<2x32xf32>
    %226 = arith.divf %224, %225 : vector<2x32xf32>
    %227 = vector.extract_strided_slice %214 {offsets = [0, 64], sizes = [2, 32], strides = [1, 1]} : vector<2x128xf32> to vector<2x32xf32>
    %228 = math.tanh %227 : vector<2x32xf32>
    %229 = vector.extract_strided_slice %214 {offsets = [0, 96], sizes = [2, 32], strides = [1, 1]} : vector<2x128xf32> to vector<2x32xf32>
    %230 = arith.negf %229 : vector<2x32xf32>
    %231 = math.exp %230 : vector<2x32xf32>
    %cst_54 = arith.constant 1.000000e+00 : f32
    %232 = vector.broadcast %cst_54 : f32 to vector<2x32xf32>
    %233 = arith.addf %232, %231 : vector<2x32xf32>
    %234 = arith.divf %232, %233 : vector<2x32xf32>
    %235 = arith.mulf %226, %208 : vector<2x32xf32>
    %236 = arith.mulf %220, %228 : vector<2x32xf32>
    %237 = arith.addf %235, %236 : vector<2x32xf32>
    %238 = math.tanh %237 : vector<2x32xf32>
    %239 = arith.mulf %234, %238 : vector<2x32xf32>
    %c0_55 = arith.constant 0 : index
    %c0_56 = arith.constant 0 : index
    %240 = vector.load %arg4[%c0_55, %c0_56] : memref<32x32xf32, #tpu.memory_space<vmem>>, vector<32x32xf32>
    %cst_57 = arith.constant dense<0.000000e+00> : vector<2x32xf32>
    %241 = tpu.matmul %239, %240, %cst_57 {dimension_numbers = #tpu.dot_dimension_numbers<[1], [0], [0], [1], [0, 0, 1, 1], [], []>} : vector<2x32xf32>, vector<32x32xf32>, vector<2x32xf32> -> vector<2x32xf32>
    %c0_58 = arith.constant 0 : index
    %c0_59 = arith.constant 0 : index
    %242 = vector.load %arg5[%c0_58, %c0_59] : memref<1x32xf32, #tpu.memory_space<vmem>>, vector<1x32xf32>
    %243 = vector.broadcast %242 : vector<1x32xf32> to vector<2x32xf32>
    %244 = arith.addf %241, %243 : vector<2x32xf32>
    %c0_60 = arith.constant 0 : index
    %c0_61 = arith.constant 0 : index
    %245 = vector.load %arg6[%c0_60, %c0_61] : memref<16x12xf32, #tpu.memory_space<vmem>>, vector<16x12xf32>
    %c0_62 = arith.constant 0 : index
    %c0_63 = arith.constant 0 : index
    %246 = vector.load %arg7[%c0_62, %c0_63] : memref<12x128xf32, #tpu.memory_space<vmem>>, vector<12x128xf32>
    %cst_64 = arith.constant dense<0.000000e+00> : vector<16x128xf32>
    %247 = tpu.matmul %245, %246, %cst_64 {dimension_numbers = #tpu.dot_dimension_numbers<[1], [0], [0], [1], [0, 0, 1, 1], [], []>} : vector<16x12xf32>, vector<12x128xf32>, vector<16x128xf32> -> vector<16x128xf32>
    %c0_65 = arith.constant 0 : index
    %c0_66 = arith.constant 0 : index
    %248 = vector.load %arg9[%c0_65, %c0_66] : memref<1x128xf32, #tpu.memory_space<vmem>>, vector<1x128xf32>
    %249 = vector.broadcast %248 : vector<1x128xf32> to vector<16x128xf32>
    %250 = arith.addf %247, %249 : vector<16x128xf32>
    %cst_67 = arith.constant 0.000000e+00 : f32
    %251 = vector.broadcast %cst_67 : f32 to vector<2x32xf32>
    %cst_68 = arith.constant 0.000000e+00 : f32
    %252 = vector.broadcast %cst_68 : f32 to vector<2x32xf32>
    %253 = vector.extract_strided_slice %250 {offsets = [0, 0], sizes = [2, 128], strides = [1, 1]} : vector<16x128xf32> to vector<2x128xf32>
    %c0_69 = arith.constant 0 : index
    %c0_70 = arith.constant 0 : index
    %254 = vector.load %arg8[%c0_69, %c0_70] : memref<32x128xf32, #tpu.memory_space<vmem>>, vector<32x128xf32>
    %cst_71 = arith.constant dense<0.000000e+00> : vector<2x128xf32>
    %255 = tpu.matmul %251, %254, %cst_71 {dimension_numbers = #tpu.dot_dimension_numbers<[1], [0], [0], [1], [0, 0, 1, 1], [], []>} : vector<2x32xf32>, vector<32x128xf32>, vector<2x128xf32> -> vector<2x128xf32>
    %256 = arith.addf %253, %255 : vector<2x128xf32>
    %257 = vector.extract_strided_slice %256 {offsets = [0, 0], sizes = [2, 32], strides = [1, 1]} : vector<2x128xf32> to vector<2x32xf32>
    %258 = arith.negf %257 : vector<2x32xf32>
    %259 = math.exp %258 : vector<2x32xf32>
    %cst_72 = arith.constant 1.000000e+00 : f32
    %260 = vector.broadcast %cst_72 : f32 to vector<2x32xf32>
    %261 = arith.addf %260, %259 : vector<2x32xf32>
    %262 = arith.divf %260, %261 : vector<2x32xf32>
    %263 = vector.extract_strided_slice %256 {offsets = [0, 32], sizes = [2, 32], strides = [1, 1]} : vector<2x128xf32> to vector<2x32xf32>
    %264 = arith.negf %263 : vector<2x32xf32>
    %265 = math.exp %264 : vector<2x32xf32>
    %cst_73 = arith.constant 1.000000e+00 : f32
    %266 = vector.broadcast %cst_73 : f32 to vector<2x32xf32>
    %267 = arith.addf %266, %265 : vector<2x32xf32>
    %268 = arith.divf %266, %267 : vector<2x32xf32>
    %269 = vector.extract_strided_slice %256 {offsets = [0, 64], sizes = [2, 32], strides = [1, 1]} : vector<2x128xf32> to vector<2x32xf32>
    %270 = math.tanh %269 : vector<2x32xf32>
    %271 = vector.extract_strided_slice %256 {offsets = [0, 96], sizes = [2, 32], strides = [1, 1]} : vector<2x128xf32> to vector<2x32xf32>
    %272 = arith.negf %271 : vector<2x32xf32>
    %273 = math.exp %272 : vector<2x32xf32>
    %cst_74 = arith.constant 1.000000e+00 : f32
    %274 = vector.broadcast %cst_74 : f32 to vector<2x32xf32>
    %275 = arith.addf %274, %273 : vector<2x32xf32>
    %276 = arith.divf %274, %275 : vector<2x32xf32>
    %277 = arith.mulf %268, %252 : vector<2x32xf32>
    %278 = arith.mulf %262, %270 : vector<2x32xf32>
    %279 = arith.addf %277, %278 : vector<2x32xf32>
    %280 = math.tanh %279 : vector<2x32xf32>
    %281 = arith.mulf %276, %280 : vector<2x32xf32>
    %282 = vector.extract_strided_slice %250 {offsets = [2, 0], sizes = [2, 128], strides = [1, 1]} : vector<16x128xf32> to vector<2x128xf32>
    %c0_75 = arith.constant 0 : index
    %c0_76 = arith.constant 0 : index
    %283 = vector.load %arg8[%c0_75, %c0_76] : memref<32x128xf32, #tpu.memory_space<vmem>>, vector<32x128xf32>
    %cst_77 = arith.constant dense<0.000000e+00> : vector<2x128xf32>
    %284 = tpu.matmul %281, %283, %cst_77 {dimension_numbers = #tpu.dot_dimension_numbers<[1], [0], [0], [1], [0, 0, 1, 1], [], []>} : vector<2x32xf32>, vector<32x128xf32>, vector<2x128xf32> -> vector<2x128xf32>
    %285 = arith.addf %282, %284 : vector<2x128xf32>
    %286 = vector.extract_strided_slice %285 {offsets = [0, 0], sizes = [2, 32], strides = [1, 1]} : vector<2x128xf32> to vector<2x32xf32>
    %287 = arith.negf %286 : vector<2x32xf32>
    %288 = math.exp %287 : vector<2x32xf32>
    %cst_78 = arith.constant 1.000000e+00 : f32
    %289 = vector.broadcast %cst_78 : f32 to vector<2x32xf32>
    %290 = arith.addf %289, %288 : vector<2x32xf32>
    %291 = arith.divf %289, %290 : vector<2x32xf32>
    %292 = vector.extract_strided_slice %285 {offsets = [0, 32], sizes = [2, 32], strides = [1, 1]} : vector<2x128xf32> to vector<2x32xf32>
    %293 = arith.negf %292 : vector<2x32xf32>
    %294 = math.exp %293 : vector<2x32xf32>
    %cst_79 = arith.constant 1.000000e+00 : f32
    %295 = vector.broadcast %cst_79 : f32 to vector<2x32xf32>
    %296 = arith.addf %295, %294 : vector<2x32xf32>
    %297 = arith.divf %295, %296 : vector<2x32xf32>
    %298 = vector.extract_strided_slice %285 {offsets = [0, 64], sizes = [2, 32], strides = [1, 1]} : vector<2x128xf32> to vector<2x32xf32>
    %299 = math.tanh %298 : vector<2x32xf32>
    %300 = vector.extract_strided_slice %285 {offsets = [0, 96], sizes = [2, 32], strides = [1, 1]} : vector<2x128xf32> to vector<2x32xf32>
    %301 = arith.negf %300 : vector<2x32xf32>
    %302 = math.exp %301 : vector<2x32xf32>
    %cst_80 = arith.constant 1.000000e+00 : f32
    %303 = vector.broadcast %cst_80 : f32 to vector<2x32xf32>
    %304 = arith.addf %303, %302 : vector<2x32xf32>
    %305 = arith.divf %303, %304 : vector<2x32xf32>
    %306 = arith.mulf %297, %279 : vector<2x32xf32>
    %307 = arith.mulf %291, %299 : vector<2x32xf32>
    %308 = arith.addf %306, %307 : vector<2x32xf32>
    %309 = math.tanh %308 : vector<2x32xf32>
    %310 = arith.mulf %305, %309 : vector<2x32xf32>
    %311 = vector.extract_strided_slice %250 {offsets = [4, 0], sizes = [2, 128], strides = [1, 1]} : vector<16x128xf32> to vector<2x128xf32>
    %c0_81 = arith.constant 0 : index
    %c0_82 = arith.constant 0 : index
    %312 = vector.load %arg8[%c0_81, %c0_82] : memref<32x128xf32, #tpu.memory_space<vmem>>, vector<32x128xf32>
    %cst_83 = arith.constant dense<0.000000e+00> : vector<2x128xf32>
    %313 = tpu.matmul %310, %312, %cst_83 {dimension_numbers = #tpu.dot_dimension_numbers<[1], [0], [0], [1], [0, 0, 1, 1], [], []>} : vector<2x32xf32>, vector<32x128xf32>, vector<2x128xf32> -> vector<2x128xf32>
    %314 = arith.addf %311, %313 : vector<2x128xf32>
    %315 = vector.extract_strided_slice %314 {offsets = [0, 0], sizes = [2, 32], strides = [1, 1]} : vector<2x128xf32> to vector<2x32xf32>
    %316 = arith.negf %315 : vector<2x32xf32>
    %317 = math.exp %316 : vector<2x32xf32>
    %cst_84 = arith.constant 1.000000e+00 : f32
    %318 = vector.broadcast %cst_84 : f32 to vector<2x32xf32>
    %319 = arith.addf %318, %317 : vector<2x32xf32>
    %320 = arith.divf %318, %319 : vector<2x32xf32>
    %321 = vector.extract_strided_slice %314 {offsets = [0, 32], sizes = [2, 32], strides = [1, 1]} : vector<2x128xf32> to vector<2x32xf32>
    %322 = arith.negf %321 : vector<2x32xf32>
    %323 = math.exp %322 : vector<2x32xf32>
    %cst_85 = arith.constant 1.000000e+00 : f32
    %324 = vector.broadcast %cst_85 : f32 to vector<2x32xf32>
    %325 = arith.addf %324, %323 : vector<2x32xf32>
    %326 = arith.divf %324, %325 : vector<2x32xf32>
    %327 = vector.extract_strided_slice %314 {offsets = [0, 64], sizes = [2, 32], strides = [1, 1]} : vector<2x128xf32> to vector<2x32xf32>
    %328 = math.tanh %327 : vector<2x32xf32>
    %329 = vector.extract_strided_slice %314 {offsets = [0, 96], sizes = [2, 32], strides = [1, 1]} : vector<2x128xf32> to vector<2x32xf32>
    %330 = arith.negf %329 : vector<2x32xf32>
    %331 = math.exp %330 : vector<2x32xf32>
    %cst_86 = arith.constant 1.000000e+00 : f32
    %332 = vector.broadcast %cst_86 : f32 to vector<2x32xf32>
    %333 = arith.addf %332, %331 : vector<2x32xf32>
    %334 = arith.divf %332, %333 : vector<2x32xf32>
    %335 = arith.mulf %326, %308 : vector<2x32xf32>
    %336 = arith.mulf %320, %328 : vector<2x32xf32>
    %337 = arith.addf %335, %336 : vector<2x32xf32>
    %338 = math.tanh %337 : vector<2x32xf32>
    %339 = arith.mulf %334, %338 : vector<2x32xf32>
    %340 = vector.extract_strided_slice %250 {offsets = [6, 0], sizes = [2, 128], strides = [1, 1]} : vector<16x128xf32> to vector<2x128xf32>
    %c0_87 = arith.constant 0 : index
    %c0_88 = arith.constant 0 : index
    %341 = vector.load %arg8[%c0_87, %c0_88] : memref<32x128xf32, #tpu.memory_space<vmem>>, vector<32x128xf32>
    %cst_89 = arith.constant dense<0.000000e+00> : vector<2x128xf32>
    %342 = tpu.matmul %339, %341, %cst_89 {dimension_numbers = #tpu.dot_dimension_numbers<[1], [0], [0], [1], [0, 0, 1, 1], [], []>} : vector<2x32xf32>, vector<32x128xf32>, vector<2x128xf32> -> vector<2x128xf32>
    %343 = arith.addf %340, %342 : vector<2x128xf32>
    %344 = vector.extract_strided_slice %343 {offsets = [0, 0], sizes = [2, 32], strides = [1, 1]} : vector<2x128xf32> to vector<2x32xf32>
    %345 = arith.negf %344 : vector<2x32xf32>
    %346 = math.exp %345 : vector<2x32xf32>
    %cst_90 = arith.constant 1.000000e+00 : f32
    %347 = vector.broadcast %cst_90 : f32 to vector<2x32xf32>
    %348 = arith.addf %347, %346 : vector<2x32xf32>
    %349 = arith.divf %347, %348 : vector<2x32xf32>
    %350 = vector.extract_strided_slice %343 {offsets = [0, 32], sizes = [2, 32], strides = [1, 1]} : vector<2x128xf32> to vector<2x32xf32>
    %351 = arith.negf %350 : vector<2x32xf32>
    %352 = math.exp %351 : vector<2x32xf32>
    %cst_91 = arith.constant 1.000000e+00 : f32
    %353 = vector.broadcast %cst_91 : f32 to vector<2x32xf32>
    %354 = arith.addf %353, %352 : vector<2x32xf32>
    %355 = arith.divf %353, %354 : vector<2x32xf32>
    %356 = vector.extract_strided_slice %343 {offsets = [0, 64], sizes = [2, 32], strides = [1, 1]} : vector<2x128xf32> to vector<2x32xf32>
    %357 = math.tanh %356 : vector<2x32xf32>
    %358 = vector.extract_strided_slice %343 {offsets = [0, 96], sizes = [2, 32], strides = [1, 1]} : vector<2x128xf32> to vector<2x32xf32>
    %359 = arith.negf %358 : vector<2x32xf32>
    %360 = math.exp %359 : vector<2x32xf32>
    %cst_92 = arith.constant 1.000000e+00 : f32
    %361 = vector.broadcast %cst_92 : f32 to vector<2x32xf32>
    %362 = arith.addf %361, %360 : vector<2x32xf32>
    %363 = arith.divf %361, %362 : vector<2x32xf32>
    %364 = arith.mulf %355, %337 : vector<2x32xf32>
    %365 = arith.mulf %349, %357 : vector<2x32xf32>
    %366 = arith.addf %364, %365 : vector<2x32xf32>
    %367 = math.tanh %366 : vector<2x32xf32>
    %368 = arith.mulf %363, %367 : vector<2x32xf32>
    %369 = vector.extract_strided_slice %250 {offsets = [8, 0], sizes = [2, 128], strides = [1, 1]} : vector<16x128xf32> to vector<2x128xf32>
    %c0_93 = arith.constant 0 : index
    %c0_94 = arith.constant 0 : index
    %370 = vector.load %arg8[%c0_93, %c0_94] : memref<32x128xf32, #tpu.memory_space<vmem>>, vector<32x128xf32>
    %cst_95 = arith.constant dense<0.000000e+00> : vector<2x128xf32>
    %371 = tpu.matmul %368, %370, %cst_95 {dimension_numbers = #tpu.dot_dimension_numbers<[1], [0], [0], [1], [0, 0, 1, 1], [], []>} : vector<2x32xf32>, vector<32x128xf32>, vector<2x128xf32> -> vector<2x128xf32>
    %372 = arith.addf %369, %371 : vector<2x128xf32>
    %373 = vector.extract_strided_slice %372 {offsets = [0, 0], sizes = [2, 32], strides = [1, 1]} : vector<2x128xf32> to vector<2x32xf32>
    %374 = arith.negf %373 : vector<2x32xf32>
    %375 = math.exp %374 : vector<2x32xf32>
    %cst_96 = arith.constant 1.000000e+00 : f32
    %376 = vector.broadcast %cst_96 : f32 to vector<2x32xf32>
    %377 = arith.addf %376, %375 : vector<2x32xf32>
    %378 = arith.divf %376, %377 : vector<2x32xf32>
    %379 = vector.extract_strided_slice %372 {offsets = [0, 32], sizes = [2, 32], strides = [1, 1]} : vector<2x128xf32> to vector<2x32xf32>
    %380 = arith.negf %379 : vector<2x32xf32>
    %381 = math.exp %380 : vector<2x32xf32>
    %cst_97 = arith.constant 1.000000e+00 : f32
    %382 = vector.broadcast %cst_97 : f32 to vector<2x32xf32>
    %383 = arith.addf %382, %381 : vector<2x32xf32>
    %384 = arith.divf %382, %383 : vector<2x32xf32>
    %385 = vector.extract_strided_slice %372 {offsets = [0, 64], sizes = [2, 32], strides = [1, 1]} : vector<2x128xf32> to vector<2x32xf32>
    %386 = math.tanh %385 : vector<2x32xf32>
    %387 = vector.extract_strided_slice %372 {offsets = [0, 96], sizes = [2, 32], strides = [1, 1]} : vector<2x128xf32> to vector<2x32xf32>
    %388 = arith.negf %387 : vector<2x32xf32>
    %389 = math.exp %388 : vector<2x32xf32>
    %cst_98 = arith.constant 1.000000e+00 : f32
    %390 = vector.broadcast %cst_98 : f32 to vector<2x32xf32>
    %391 = arith.addf %390, %389 : vector<2x32xf32>
    %392 = arith.divf %390, %391 : vector<2x32xf32>
    %393 = arith.mulf %384, %366 : vector<2x32xf32>
    %394 = arith.mulf %378, %386 : vector<2x32xf32>
    %395 = arith.addf %393, %394 : vector<2x32xf32>
    %396 = math.tanh %395 : vector<2x32xf32>
    %397 = arith.mulf %392, %396 : vector<2x32xf32>
    %398 = vector.extract_strided_slice %250 {offsets = [10, 0], sizes = [2, 128], strides = [1, 1]} : vector<16x128xf32> to vector<2x128xf32>
    %c0_99 = arith.constant 0 : index
    %c0_100 = arith.constant 0 : index
    %399 = vector.load %arg8[%c0_99, %c0_100] : memref<32x128xf32, #tpu.memory_space<vmem>>, vector<32x128xf32>
    %cst_101 = arith.constant dense<0.000000e+00> : vector<2x128xf32>
    %400 = tpu.matmul %397, %399, %cst_101 {dimension_numbers = #tpu.dot_dimension_numbers<[1], [0], [0], [1], [0, 0, 1, 1], [], []>} : vector<2x32xf32>, vector<32x128xf32>, vector<2x128xf32> -> vector<2x128xf32>
    %401 = arith.addf %398, %400 : vector<2x128xf32>
    %402 = vector.extract_strided_slice %401 {offsets = [0, 0], sizes = [2, 32], strides = [1, 1]} : vector<2x128xf32> to vector<2x32xf32>
    %403 = arith.negf %402 : vector<2x32xf32>
    %404 = math.exp %403 : vector<2x32xf32>
    %cst_102 = arith.constant 1.000000e+00 : f32
    %405 = vector.broadcast %cst_102 : f32 to vector<2x32xf32>
    %406 = arith.addf %405, %404 : vector<2x32xf32>
    %407 = arith.divf %405, %406 : vector<2x32xf32>
    %408 = vector.extract_strided_slice %401 {offsets = [0, 32], sizes = [2, 32], strides = [1, 1]} : vector<2x128xf32> to vector<2x32xf32>
    %409 = arith.negf %408 : vector<2x32xf32>
    %410 = math.exp %409 : vector<2x32xf32>
    %cst_103 = arith.constant 1.000000e+00 : f32
    %411 = vector.broadcast %cst_103 : f32 to vector<2x32xf32>
    %412 = arith.addf %411, %410 : vector<2x32xf32>
    %413 = arith.divf %411, %412 : vector<2x32xf32>
    %414 = vector.extract_strided_slice %401 {offsets = [0, 64], sizes = [2, 32], strides = [1, 1]} : vector<2x128xf32> to vector<2x32xf32>
    %415 = math.tanh %414 : vector<2x32xf32>
    %416 = vector.extract_strided_slice %401 {offsets = [0, 96], sizes = [2, 32], strides = [1, 1]} : vector<2x128xf32> to vector<2x32xf32>
    %417 = arith.negf %416 : vector<2x32xf32>
    %418 = math.exp %417 : vector<2x32xf32>
    %cst_104 = arith.constant 1.000000e+00 : f32
    %419 = vector.broadcast %cst_104 : f32 to vector<2x32xf32>
    %420 = arith.addf %419, %418 : vector<2x32xf32>
    %421 = arith.divf %419, %420 : vector<2x32xf32>
    %422 = arith.mulf %413, %395 : vector<2x32xf32>
    %423 = arith.mulf %407, %415 : vector<2x32xf32>
    %424 = arith.addf %422, %423 : vector<2x32xf32>
    %425 = math.tanh %424 : vector<2x32xf32>
    %426 = arith.mulf %421, %425 : vector<2x32xf32>
    %427 = vector.extract_strided_slice %250 {offsets = [12, 0], sizes = [2, 128], strides = [1, 1]} : vector<16x128xf32> to vector<2x128xf32>
    %c0_105 = arith.constant 0 : index
    %c0_106 = arith.constant 0 : index
    %428 = vector.load %arg8[%c0_105, %c0_106] : memref<32x128xf32, #tpu.memory_space<vmem>>, vector<32x128xf32>
    %cst_107 = arith.constant dense<0.000000e+00> : vector<2x128xf32>
    %429 = tpu.matmul %426, %428, %cst_107 {dimension_numbers = #tpu.dot_dimension_numbers<[1], [0], [0], [1], [0, 0, 1, 1], [], []>} : vector<2x32xf32>, vector<32x128xf32>, vector<2x128xf32> -> vector<2x128xf32>
    %430 = arith.addf %427, %429 : vector<2x128xf32>
    %431 = vector.extract_strided_slice %430 {offsets = [0, 0], sizes = [2, 32], strides = [1, 1]} : vector<2x128xf32> to vector<2x32xf32>
    %432 = arith.negf %431 : vector<2x32xf32>
    %433 = math.exp %432 : vector<2x32xf32>
    %cst_108 = arith.constant 1.000000e+00 : f32
    %434 = vector.broadcast %cst_108 : f32 to vector<2x32xf32>
    %435 = arith.addf %434, %433 : vector<2x32xf32>
    %436 = arith.divf %434, %435 : vector<2x32xf32>
    %437 = vector.extract_strided_slice %430 {offsets = [0, 32], sizes = [2, 32], strides = [1, 1]} : vector<2x128xf32> to vector<2x32xf32>
    %438 = arith.negf %437 : vector<2x32xf32>
    %439 = math.exp %438 : vector<2x32xf32>
    %cst_109 = arith.constant 1.000000e+00 : f32
    %440 = vector.broadcast %cst_109 : f32 to vector<2x32xf32>
    %441 = arith.addf %440, %439 : vector<2x32xf32>
    %442 = arith.divf %440, %441 : vector<2x32xf32>
    %443 = vector.extract_strided_slice %430 {offsets = [0, 64], sizes = [2, 32], strides = [1, 1]} : vector<2x128xf32> to vector<2x32xf32>
    %444 = math.tanh %443 : vector<2x32xf32>
    %445 = vector.extract_strided_slice %430 {offsets = [0, 96], sizes = [2, 32], strides = [1, 1]} : vector<2x128xf32> to vector<2x32xf32>
    %446 = arith.negf %445 : vector<2x32xf32>
    %447 = math.exp %446 : vector<2x32xf32>
    %cst_110 = arith.constant 1.000000e+00 : f32
    %448 = vector.broadcast %cst_110 : f32 to vector<2x32xf32>
    %449 = arith.addf %448, %447 : vector<2x32xf32>
    %450 = arith.divf %448, %449 : vector<2x32xf32>
    %451 = arith.mulf %442, %424 : vector<2x32xf32>
    %452 = arith.mulf %436, %444 : vector<2x32xf32>
    %453 = arith.addf %451, %452 : vector<2x32xf32>
    %454 = math.tanh %453 : vector<2x32xf32>
    %455 = arith.mulf %450, %454 : vector<2x32xf32>
    %456 = vector.extract_strided_slice %250 {offsets = [14, 0], sizes = [2, 128], strides = [1, 1]} : vector<16x128xf32> to vector<2x128xf32>
    %c0_111 = arith.constant 0 : index
    %c0_112 = arith.constant 0 : index
    %457 = vector.load %arg8[%c0_111, %c0_112] : memref<32x128xf32, #tpu.memory_space<vmem>>, vector<32x128xf32>
    %cst_113 = arith.constant dense<0.000000e+00> : vector<2x128xf32>
    %458 = tpu.matmul %455, %457, %cst_113 {dimension_numbers = #tpu.dot_dimension_numbers<[1], [0], [0], [1], [0, 0, 1, 1], [], []>} : vector<2x32xf32>, vector<32x128xf32>, vector<2x128xf32> -> vector<2x128xf32>
    %459 = arith.addf %456, %458 : vector<2x128xf32>
    %460 = vector.extract_strided_slice %459 {offsets = [0, 0], sizes = [2, 32], strides = [1, 1]} : vector<2x128xf32> to vector<2x32xf32>
    %461 = arith.negf %460 : vector<2x32xf32>
    %462 = math.exp %461 : vector<2x32xf32>
    %cst_114 = arith.constant 1.000000e+00 : f32
    %463 = vector.broadcast %cst_114 : f32 to vector<2x32xf32>
    %464 = arith.addf %463, %462 : vector<2x32xf32>
    %465 = arith.divf %463, %464 : vector<2x32xf32>
    %466 = vector.extract_strided_slice %459 {offsets = [0, 32], sizes = [2, 32], strides = [1, 1]} : vector<2x128xf32> to vector<2x32xf32>
    %467 = arith.negf %466 : vector<2x32xf32>
    %468 = math.exp %467 : vector<2x32xf32>
    %cst_115 = arith.constant 1.000000e+00 : f32
    %469 = vector.broadcast %cst_115 : f32 to vector<2x32xf32>
    %470 = arith.addf %469, %468 : vector<2x32xf32>
    %471 = arith.divf %469, %470 : vector<2x32xf32>
    %472 = vector.extract_strided_slice %459 {offsets = [0, 64], sizes = [2, 32], strides = [1, 1]} : vector<2x128xf32> to vector<2x32xf32>
    %473 = math.tanh %472 : vector<2x32xf32>
    %474 = vector.extract_strided_slice %459 {offsets = [0, 96], sizes = [2, 32], strides = [1, 1]} : vector<2x128xf32> to vector<2x32xf32>
    %475 = arith.negf %474 : vector<2x32xf32>
    %476 = math.exp %475 : vector<2x32xf32>
    %cst_116 = arith.constant 1.000000e+00 : f32
    %477 = vector.broadcast %cst_116 : f32 to vector<2x32xf32>
    %478 = arith.addf %477, %476 : vector<2x32xf32>
    %479 = arith.divf %477, %478 : vector<2x32xf32>
    %480 = arith.mulf %471, %453 : vector<2x32xf32>
    %481 = arith.mulf %465, %473 : vector<2x32xf32>
    %482 = arith.addf %480, %481 : vector<2x32xf32>
    %483 = math.tanh %482 : vector<2x32xf32>
    %484 = arith.mulf %479, %483 : vector<2x32xf32>
    %c0_117 = arith.constant 0 : index
    %c0_118 = arith.constant 0 : index
    %485 = vector.load %arg10[%c0_117, %c0_118] : memref<32x32xf32, #tpu.memory_space<vmem>>, vector<32x32xf32>
    %cst_119 = arith.constant dense<0.000000e+00> : vector<2x32xf32>
    %486 = tpu.matmul %484, %485, %cst_119 {dimension_numbers = #tpu.dot_dimension_numbers<[1], [0], [0], [1], [0, 0, 1, 1], [], []>} : vector<2x32xf32>, vector<32x32xf32>, vector<2x32xf32> -> vector<2x32xf32>
    %c0_120 = arith.constant 0 : index
    %c0_121 = arith.constant 0 : index
    %487 = vector.load %arg11[%c0_120, %c0_121] : memref<1x32xf32, #tpu.memory_space<vmem>>, vector<1x32xf32>
    %488 = vector.broadcast %487 : vector<1x32xf32> to vector<2x32xf32>
    %489 = arith.addf %486, %488 : vector<2x32xf32>
    %c0_122 = arith.constant 0 : index
    %c0_123 = arith.constant 0 : index
    %490 = vector.load %arg12[%c0_122, %c0_123] : memref<32x32xf32, #tpu.memory_space<vmem>>, vector<32x32xf32>
    %cst_124 = arith.constant dense<0.000000e+00> : vector<2x32xf32>
    %491 = tpu.matmul %244, %490, %cst_124 {dimension_numbers = #tpu.dot_dimension_numbers<[1], [0], [0], [1], [0, 0, 1, 1], [], []>} : vector<2x32xf32>, vector<32x32xf32>, vector<2x32xf32> -> vector<2x32xf32>
    %c0_125 = arith.constant 0 : index
    %c0_126 = arith.constant 0 : index
    %492 = vector.load %arg13[%c0_125, %c0_126] : memref<1x32xf32, #tpu.memory_space<vmem>>, vector<1x32xf32>
    %493 = vector.broadcast %492 : vector<1x32xf32> to vector<2x32xf32>
    %494 = arith.addf %491, %493 : vector<2x32xf32>
    %c0_127 = arith.constant 0 : index
    %c0_128 = arith.constant 0 : index
    %495 = vector.load %arg14[%c0_127, %c0_128] : memref<32x32xf32, #tpu.memory_space<vmem>>, vector<32x32xf32>
    %cst_129 = arith.constant dense<0.000000e+00> : vector<2x32xf32>
    %496 = tpu.matmul %489, %495, %cst_129 {dimension_numbers = #tpu.dot_dimension_numbers<[1], [0], [0], [1], [0, 0, 1, 1], [], []>} : vector<2x32xf32>, vector<32x32xf32>, vector<2x32xf32> -> vector<2x32xf32>
    %c0_130 = arith.constant 0 : index
    %c0_131 = arith.constant 0 : index
    %497 = vector.load %arg15[%c0_130, %c0_131] : memref<1x32xf32, #tpu.memory_space<vmem>>, vector<1x32xf32>
    %498 = vector.broadcast %497 : vector<1x32xf32> to vector<2x32xf32>
    %499 = arith.addf %496, %498 : vector<2x32xf32>
    %500 = arith.mulf %494, %499 : vector<2x32xf32>
    %c0_132 = arith.constant 0 : index
    %c0_133 = arith.constant 0 : index
    %501 = vector.load %arg16[%c0_132, %c0_133] : memref<1x8xf32, #tpu.memory_space<vmem>>, vector<1x8xf32>
    %502 = vector.extract_strided_slice %500 {offsets = [0, 0], sizes = [2, 8], strides = [1, 1]} : vector<2x32xf32> to vector<2x8xf32>
    %503 = vector.broadcast %501 : vector<1x8xf32> to vector<2x8xf32>
    %504 = arith.addf %503, %502 : vector<2x8xf32>
    %505 = vector.extract_strided_slice %500 {offsets = [0, 8], sizes = [2, 8], strides = [1, 1]} : vector<2x32xf32> to vector<2x8xf32>
    %506 = arith.addf %504, %505 : vector<2x8xf32>
    %507 = vector.extract_strided_slice %500 {offsets = [0, 16], sizes = [2, 8], strides = [1, 1]} : vector<2x32xf32> to vector<2x8xf32>
    %508 = arith.addf %506, %507 : vector<2x8xf32>
    %509 = vector.extract_strided_slice %500 {offsets = [0, 24], sizes = [2, 8], strides = [1, 1]} : vector<2x32xf32> to vector<2x8xf32>
    %510 = arith.addf %508, %509 : vector<2x8xf32>
    %c0_134 = arith.constant 0 : index
    %c0_135 = arith.constant 0 : index
    %511 = vector.load %arg17[%c0_134, %c0_135] : memref<2x8xf32, #tpu.memory_space<vmem>>, vector<2x8xf32>
    tpu.vector_store %arg17[%c0_134, %c0_135], %510 {strides = array<i32>} : memref<2x8xf32, #tpu.memory_space<vmem>>, vector<2x8xf32>,
    return
  }
}

</mosaic_0001>

<bundles_post_ra>
// kernel: tpu_custom_call.1
= control target key start
LH: loop header
LB: loop body
LE: loop exit
PB: predicated region body
PF: predicated region fallthrough
CT: control target
= control target key end

     0   :  { %s3899_s0 = inlined_call_operand.hbm [shape: f32[16,16], index: 0, kind: input, shape index: {}]   ;;  %s3900_s1 = inlined_call_operand.hbm [shape: f32[16,128], index: 1, kind: input, shape index: {}]   ;;  %s3901_s2 = inlined_call_operand.hbm [shape: f32[32,128], index: 2, kind: input, shape index: {}]   ;;  %s3902_s3 = inlined_call_operand.vmem [shape: f32[1,128], index: 3, kind: input, shape index: {}]   ;;  %s3903_s4 = inlined_call_operand.hbm [shape: f32[32,32], index: 4, kind: input, shape index: {}]   ;;  %s3904_s5 = inlined_call_operand.vmem [shape: f32[1,32], index: 5, kind: input, shape index: {}]   ;;  %s3905_s6 = inlined_call_operand.hbm [shape: f32[16,12], index: 6, kind: input, shape index: {}]   ;;  %s3906_s7 = inlined_call_operand.hbm [shape: f32[12,128], index: 7, kind: input, shape index: {}]   ;;  %s3907_s8 = inlined_call_operand.hbm [shape: f32[32,128], index: 8, kind: input, shape index: {}]   ;;  %s3908_s9 = inlined_call_operand.vmem [shape: f32[1,128], index: 9, kind: input, shape index: {}]   ;;  %s3909_s10 = inlined_call_operand.vmem [shape: f32[32,32], index: 10, kind: input, shape index: {}]   ;;  %s3910_s11 = inlined_call_operand.vmem [shape: f32[1,32], index: 11, kind: input, shape index: {}]   ;;  %s3911_s12 = inlined_call_operand.hbm [shape: f32[32,32], index: 12, kind: input, shape index: {}]   ;;  %s3912_s13 = inlined_call_operand.vmem [shape: f32[1,32], index: 13, kind: input, shape index: {}]   ;;  %s3913_s14 = inlined_call_operand.hbm [shape: f32[32,32], index: 14, kind: input, shape index: {}]   ;;  %s3914_s15 = inlined_call_operand.vmem [shape: f32[1,32], index: 15, kind: input, shape index: {}]   ;;  %s3915_s16 = inlined_call_operand.vmem [shape: f32[1,8], index: 16, kind: input, shape index: {}]   ;;  %s3916_s17 = inlined_call_operand.hbm [shape: f32[2,8], index: 17, kind: output, shape index: {}]  }
   0x1   :  { %3920 = sst [smem:[#allocation24_spill]] %s3899_s0 }
   0x2   :  { %3921 = sst [smem:[#allocation25_spill]] %s3900_s1 }
   0x3   :  { %3922 = sst [smem:[#allocation26_spill]] %s3916_s17 }
   0x4   :  { %22 = vsyncpa [#allocation3], 0 }
   0x5   :  { %23 = vsyncpa [#allocation6], 0 }
   0x6   :  { %24 = vsyncpa [#allocation9], 0 }
   0x7   :  { %25 = vsyncpa [#allocation12], 0 }
   0x8   :  { %26 = vsyncpa [#allocation15], 0 }
   0x9   :  { %27 = vsyncpa [#allocation4], 0  ;;  %s3343_s24 = smov [#allocation5]   ;;  %s3344_s26 = smov [#allocation8]  }
   0xa   :  { %s45_s25 = sshll.u32 %s3343_s24, 4  ;;  %s71_s27 = sshll.u32 %s3344_s26, 4  ;;  %s46_s25 = int_to_ptr.vmem [resolvable:$true] %s45_s25  ;;  %s3454_s27 = int_to_ptr.vmem [resolvable:$true] %s71_s27 }
   0xb   :  { %s3923_s0 = sld [smem:[#allocation25_spill]] }
  0x11   :  { %s3111_s30 = scalar_lea.hbm %s3923_s0, 256 }
  0x12   :  { %p3112_p0 = scmp.ne.s32.totalorder %s3923_s0, %s3111_s30  ;;  %p3115_p1 = scmp.lt.u32.totalorder %s3111_s30, %s3923_s0 }
  0x14   :  { %p3117_p2 = pnand %p3115_p1, %p3112_p0 }
  0x16   :  { %3120 = shalt.err (!%p3117_p2)
}
  0x17   :  { %s3121_s21 = scalar_lea.vmem %s46_s25, 256  ;;  %p3126_p4 = scmp.lt.s32.totalorder %s46_s25, %s46_s25 }
  0x18   :  { %p3122_p3 = scmp.ne.s32.totalorder %s46_s25, %s3121_s21  ;;  %p3127_p5 = scmp.lt.s32.totalorder %s3121_s21, %s3121_s21 }
  0x1a   :  { %p3128_p6 = por %p3127_p5, %p3126_p4 }
  0x1c   :  { %p3129_p7 = pnand %p3128_p6, %p3122_p3 }
  0x1e   :  { %3132 = shalt.err (!%p3129_p7)
}
  0x1f   :  { %s3345_s22 = smov 128   ;;  %s3346_s23 = smov 8  }
  0x20   :  { %51 = dma.hbm_to_vmem [thread:$0]  %s3923_s0, 256, %s46_s25, [#allocation6], %s3345_s22, %s3345_s22, %s3346_s23  }
  0x21   :  { %s3133_s30 = scalar_lea.hbm %s3903_s4, 512 }
  0x22   :  { %p3134_p8 = scmp.ne.s32.totalorder %s3903_s4, %s3133_s30  ;;  %p3137_p9 = scmp.lt.u32.totalorder %s3133_s30, %s3903_s4 }
  0x24   :  { %p3139_p10 = pnand %p3137_p9, %p3134_p8 }
  0x26   :  { %3142 = shalt.err (!%p3139_p10)
}
  0x27   :  { %s3143_s21 = scalar_lea.vmem %s3454_s27, 512  ;;  %p3148_p12 = scmp.lt.s32.totalorder %s3454_s27, %s3454_s27 }
  0x28   :  { %p3144_p11 = scmp.ne.s32.totalorder %s3454_s27, %s3143_s21  ;;  %p3149_p13 = scmp.lt.s32.totalorder %s3143_s21, %s3143_s21 }
  0x2a   :  { %p3150_p0 = por %p3149_p13, %p3148_p12 }
  0x2c   :  { %p3151_p1 = pnand %p3150_p0, %p3144_p11 }
  0x2e   :  { %3154 = shalt.err (!%p3151_p1)
}
  0x2f   :  { %77 = dma.hbm_to_vmem [thread:$0]  %s3903_s4, 512, %s3454_s27, [#allocation9], %s3345_s22, %s3345_s22, %s3346_s23  }
  0x30   :  { %s3347_s24 = smov [#allocation11]   ;;  %s3348_s28 = smov [#allocation14]  }
  0x31   :  { %s97_s26 = sshll.u32 %s3347_s24, 4  ;;  %s127_s29 = sshll.u32 %s3348_s28, 4  ;;  %s98_s26 = int_to_ptr.vmem [resolvable:$true] %s97_s26  ;;  %s3491_s29 = int_to_ptr.vmem [resolvable:$true] %s127_s29 }
  0x32   :  { %s3155_s19 = scalar_lea.hbm %s3906_s7, 256 }
  0x33   :  { %p3156_p2 = scmp.ne.s32.totalorder %s3906_s7, %s3155_s19  ;;  %p3159_p3 = scmp.lt.u32.totalorder %s3155_s19, %s3906_s7 }
  0x35   :  { %p3161_p4 = pnand %p3159_p3, %p3156_p2 }
  0x37   :  { %3164 = shalt.err (!%p3161_p4)
}
  0x38   :  { %s3165_s4 = scalar_lea.vmem %s98_s26, 256  ;;  %p3170_p6 = scmp.lt.s32.totalorder %s98_s26, %s98_s26 }
  0x39   :  { %p3166_p5 = scmp.ne.s32.totalorder %s98_s26, %s3165_s4  ;;  %p3171_p7 = scmp.lt.s32.totalorder %s3165_s4, %s3165_s4 }
  0x3b   :  { %p3172_p8 = por %p3171_p7, %p3170_p6 }
  0x3d   :  { %p3173_p9 = pnand %p3172_p8, %p3166_p5 }
  0x3f   :  { %3176 = shalt.err (!%p3173_p9)
}
  0x40   :  { %103 = dma.hbm_to_vmem [thread:$0]  %s3906_s7, 256, %s98_s26, [#allocation12], %s3345_s22, %s3345_s22, %s3346_s23  }
  0x41   :  { %s3177_s17 = scalar_lea.hbm %s3911_s12, 512 }
  0x42   :  { %p3178_p10 = scmp.ne.s32.totalorder %s3911_s12, %s3177_s17  ;;  %p3181_p11 = scmp.lt.u32.totalorder %s3177_s17, %s3911_s12 }
  0x44   :  { %p3183_p12 = pnand %p3181_p11, %p3178_p10 }
  0x46   :  { %3186 = shalt.err (!%p3183_p12)
}
  0x47   :  { %s3187_s1 = scalar_lea.vmem %s3491_s29, 512  ;;  %p3192_p0 = scmp.lt.s32.totalorder %s3491_s29, %s3491_s29 }
  0x48   :  { %p3188_p13 = scmp.ne.s32.totalorder %s3491_s29, %s3187_s1  ;;  %p3193_p1 = scmp.lt.s32.totalorder %s3187_s1, %s3187_s1 }
  0x4a   :  { %p3194_p2 = por %p3193_p1, %p3192_p0 }
  0x4c   :  { %p3195_p3 = pnand %p3194_p2, %p3188_p13 }
  0x4e   :  { %3198 = shalt.err (!%p3195_p3)
}
  0x4f   :  { %133 = dma.hbm_to_vmem [thread:$0]  %s3911_s12, 512, %s3491_s29, [#allocation15], %s3345_s22, %s3345_s22, %s3346_s23  }
  0x50   :  { %s3349_s20 = smov [#allocation2]   ;;  %s3350_s4 = smov [#allocation7]  }
  0x51   :  { %s33_s21 = sshll.u32 %s3349_s20, 4  ;;  %s57_s27 = sshll.u32 %s3350_s4, 4  ;;  %s34_s21 = int_to_ptr.vmem [resolvable:$true] %s33_s21  ;;  %s3528_s27 = int_to_ptr.vmem [resolvable:$true] %s57_s27 }
  0x52   :  { %s3924_s24 = sld [smem:[#allocation24_spill]] }
  0x58   :  { %s3199_s17 = scalar_lea.hbm %s3924_s24, 256 }
  0x59   :  { %p3200_p4 = scmp.ne.s32.totalorder %s3924_s24, %s3199_s17  ;;  %p3203_p5 = scmp.lt.u32.totalorder %s3199_s17, %s3924_s24 }
  0x5b   :  { %p3205_p6 = pnand %p3203_p5, %p3200_p4 }
  0x5d   :  { %3208 = shalt.err (!%p3205_p6)
}
  0x5e   :  { %s3209_s12 = scalar_lea.vmem %s34_s21, 256  ;;  %p3214_p8 = scmp.lt.s32.totalorder %s34_s21, %s34_s21 }
  0x5f   :  { %p3210_p7 = scmp.ne.s32.totalorder %s34_s21, %s3209_s12  ;;  %p3215_p9 = scmp.lt.s32.totalorder %s3209_s12, %s3209_s12 }
  0x61   :  { %p3216_p10 = por %p3215_p9, %p3214_p8 }
  0x63   :  { %p3217_p11 = pnand %p3216_p10, %p3210_p7 }
  0x65   :  { %3220 = shalt.err (!%p3217_p11)
}
  0x66   :  { %39 = dma.hbm_to_vmem [thread:$0]  %s3924_s24, 256, %s34_s21, [#allocation3], %s3345_s22, %s3345_s22, %s3346_s23  }
  0x67   :  { %s3221_s20 = scalar_lea.hbm %s3901_s2, 512 }
  0x68   :  { %p3222_p12 = scmp.ne.s32.totalorder %s3901_s2, %s3221_s20  ;;  %p3225_p13 = scmp.lt.u32.totalorder %s3221_s20, %s3901_s2 }
  0x6a   :  { %p3227_p0 = pnand %p3225_p13, %p3222_p12 }
  0x6c   :  { %3230 = shalt.err (!%p3227_p0)
}
  0x6d   :  { %s3231_s28 = scalar_lea.vmem %s3528_s27, 512  ;;  %p3236_p2 = scmp.lt.s32.totalorder %s3528_s27, %s3528_s27 }
  0x6e   :  { %p3232_p1 = scmp.ne.s32.totalorder %s3528_s27, %s3231_s28  ;;  %p3237_p3 = scmp.lt.s32.totalorder %s3231_s28, %s3231_s28 }
  0x70   :  { %p3238_p4 = por %p3237_p3, %p3236_p2 }
  0x72   :  { %p3239_p5 = pnand %p3238_p4, %p3232_p1 }
  0x74   :  { %3242 = shalt.err (!%p3239_p5)
}
  0x75   :  { %63 = dma.hbm_to_vmem [thread:$0]  %s3901_s2, 512, %s3528_s27, [#allocation6], %s3345_s22, %s3345_s22, %s3346_s23  }
  0x76   :  { %s3351_s30 = smov [#allocation10]   ;;  %s3352_s19 = smov [#allocation13]  }
  0x77   :  { %s85_s18 = sshll.u32 %s3351_s30, 4  ;;  %s109_s12 = sshll.u32 %s3352_s19, 4  ;;  %s86_s18 = int_to_ptr.vmem [resolvable:$true] %s85_s18  ;;  %s3565_s12 = int_to_ptr.vmem [resolvable:$true] %s109_s12 }
  0x78   :  { %s3243_s7 = scalar_lea.hbm %s3905_s6, 256 }
  0x79   :  { %p3244_p6 = scmp.ne.s32.totalorder %s3905_s6, %s3243_s7  ;;  %p3247_p7 = scmp.lt.u32.totalorder %s3243_s7, %s3905_s6 }
  0x7b   :  { %p3249_p8 = pnand %p3247_p7, %p3244_p6 }
  0x7d   :  { %3252 = shalt.err (!%p3249_p8)
}
  0x7e   :  { %s3253_s2 = scalar_lea.vmem %s86_s18, 256  ;;  %p3258_p10 = scmp.lt.s32.totalorder %s86_s18, %s86_s18 }
  0x7f   :  { %p3254_p9 = scmp.ne.s32.totalorder %s86_s18, %s3253_s2  ;;  %p3259_p11 = scmp.lt.s32.totalorder %s3253_s2, %s3253_s2 }
  0x81   :  { %p3260_p12 = por %p3259_p11, %p3258_p10 }
  0x83   :  { %p3261_p13 = pnand %p3260_p12, %p3254_p9 }
  0x85   :  { %3264 = shalt.err (!%p3261_p13)
}
  0x86   :  { %91 = dma.hbm_to_vmem [thread:$0]  %s3905_s6, 256, %s86_s18, [#allocation9], %s3345_s22, %s3345_s22, %s3346_s23  }
  0x87   :  { %s3265_s21 = scalar_lea.hbm %s3907_s8, 512 }
  0x88   :  { %p3266_p0 = scmp.ne.s32.totalorder %s3907_s8, %s3265_s21  ;;  %p3269_p1 = scmp.lt.u32.totalorder %s3265_s21, %s3907_s8 }
  0x8a   :  { %p3271_p2 = pnand %p3269_p1, %p3266_p0 }
  0x8c   :  { %3274 = shalt.err (!%p3271_p2)
}
  0x8d   :  { %s3275_s1 = scalar_lea.vmem %s3565_s12, 512  ;;  %p3280_p4 = scmp.lt.s32.totalorder %s3565_s12, %s3565_s12 }
  0x8e   :  { %p3276_p3 = scmp.ne.s32.totalorder %s3565_s12, %s3275_s1  ;;  %p3281_p5 = scmp.lt.s32.totalorder %s3275_s1, %s3275_s1 }
  0x90   :  { %p3282_p6 = por %p3281_p5, %p3280_p4 }
  0x92   :  { %p3283_p7 = pnand %p3282_p6, %p3276_p3 }
  0x94   :  { %3286 = shalt.err (!%p3283_p7)
}
  0x95   :  { %115 = dma.hbm_to_vmem [thread:$0]  %s3907_s8, 512, %s3565_s12, [#allocation12], %s3345_s22, %s3345_s22, %s3346_s23  }
  0x96   :  { %s3353_s7 = smov [#allocation16]   ;;  %s3287_s25 = scalar_lea.hbm %s3913_s14, 512 }
  0x97   :  { %s141_s26 = sshll.u32 %s3353_s7, 4  ;;  %p3288_p8 = scmp.ne.s32.totalorder %s3913_s14, %s3287_s25  ;;  %s142_s26 = int_to_ptr.vmem [resolvable:$true] %s141_s26 }
  0x98   :  { %p3291_p9 = scmp.lt.u32.totalorder %s3287_s25, %s3913_s14 }
  0x9a   :  { %p3293_p10 = pnand %p3291_p9, %p3288_p8 }
  0x9c   :  { %3296 = shalt.err (!%p3293_p10)
}
  0x9d   :  { %s3297_s28 = scalar_lea.vmem %s142_s26, 512  ;;  %p3302_p12 = scmp.lt.s32.totalorder %s142_s26, %s142_s26 }
  0x9e   :  { %p3298_p11 = scmp.ne.s32.totalorder %s142_s26, %s3297_s28  ;;  %p3303_p13 = scmp.lt.s32.totalorder %s3297_s28, %s3297_s28 }
  0xa0   :  { %p3304_p0 = por %p3303_p13, %p3302_p12 }
  0xa2   :  { %p3305_p1 = pnand %p3304_p0, %p3298_p11 }
  0xa4   :  { %3308 = shalt.err (!%p3305_p1)
}
  0xa5   :  { %147 = dma.hbm_to_vmem [thread:$0]  %s3913_s14, 512, %s142_s26, [#allocation15], %s3345_s22, %s3345_s22, %s3346_s23  }
  0xa6   :  { %3331 = dma.done.wait [#allocation3], 256  }
  0xa7   :  { %3332 = vsyncadd [#allocation3], 4294967040 }
  0xa8   :  { %3333 = dma.done.wait [#allocation6], 768  }
  0xa9   :  { %3334 = vsyncadd [#allocation6], 4294966528 }
  0xaa   :  { %3335 = dma.done.wait [#allocation9], 768  }
  0xab   :  { %3336 = vsyncadd [#allocation9], 4294966528 }
  0xac   :  { %3337 = dma.done.wait [#allocation12], 768  }
  0xad   :  { %3338 = vsyncadd [#allocation12], 4294966528 }
  0xae   :  { %3339 = dma.done.wait [#allocation15], 1024  }
  0xaf   :  { %3340 = vsyncadd [#allocation15], 4294966272  ;;  %v3354_v0 = vmov 0.0|0.0   ;;  %vm3355_vm0 = vmmov 0   ;;  %v3356_v1 = vmov 0.0   ;;  %vm190_vm1 = vcmask 130048  }
  0xb0   :  { %2842 = vmatprep.subr.bf16.mxu0 %v3354_v0  ;;  %2624 = vmatprep.mubr.msk.f32.mxu0 %vm3355_vm0, %v3356_v1  ;;  %v181_v2 = vld [vmem:[#allocation5] sm:$0xff]  ;;  %v182_v3 = vld [vmem:[#allocation5 + $0x8] sm:$0xff]  ;;  %v179_v4 = vld [vmem:[#allocation2] sm:$0xff]  ;;  %s3357_s23 = smov 64   ;;  %vm276_vm2 = vcmask 261120   ;;  %vm1224_vm3 = vcmask 1043456  }
  0xb1   :  { %v2832_v5 = vpack.c.bf16 %v182_v3, %v181_v2  ;;  %2602 = vmatprep.mubr.msk.f32.mxu1 %vm190_vm1, %v179_v4  ;;  %v272_v6 = vld [vmem:[#allocation7] sm:$0xff]  ;;  %v273_v7 = vld [vmem:[#allocation7 + $0x8] sm:$0xff]  ;;  %v274_v10 = vld [vmem:[#allocation7 + $0x10] sm:$0xff]  ;;  %vm3359_vm4 = vmmov 1   ;;  %vm1217_vm6 = vcmask 97280   ;;  %s3360_s0 = smov 112  }
  0xb2   :  { %v3621_v8 = vpack.c.bf16 %v273_v7, %v272_v6  ;;  %v180_v9 = vld [vmem:[#allocation2 + $0x8] sm:$0xff]  ;;  %v275_v11 = vld [vmem:[#allocation7 + $0x18] sm:$0xff]  ;;  %v2444_v13 = vld [vmem:[%s3902_s3] ss:$0 sm:$0xff]  ;;  %s3358_s3 = smov 32   ;;  %s3362_s17 = smov 104  }
  0xb3   :  { %2833 = vmatprep.subr.bf16.mxu1 %v2832_v5  ;;  %v3627_v12 = vpack.c.bf16 %v275_v11, %v274_v10  ;;  %vm2891_vm5 = vmpackc.low %vm1224_vm3, %vm3359_vm4  ;;  %vm2423_vm7 = vcmask 58368  }
  0xb4   :  { %2835 = vmatpush3.bf16.msra.mxu1 %v2832_v5  ;;  %2844 = vmatpush3.bf16.msra.mxu0 %v3621_v8 }
  0xb5   :  { %2836 = vmatprep.subr.bf16.mxu1 %v3354_v0  ;;  %2845 = vmatprep.subr.bf16.mxu0 %v3354_v0 }
  0xb7   :  { %2603 = vmatmul.mubr.msk.f32.vlgmr.msra.gmra.mrb[0].mxu1 %vm190_vm1, %v180_v9 }
  0xb8   :  { %2838 = vmatpush3.bf16.msra.mxu1 %v3621_v8  ;;  %2613 = vmatprep.mubr.msk.f32.mxu1 %vm3355_vm0, %v3356_v1 }
  0xb9   :  { %2839 = vmatprep.subr.bf16.mxu1 %v3354_v0  ;;  %2847 = vmatpush3.bf16.msra.mxu0 %v3627_v12 }
  0xba   :  { %2854 = vmatprep.subr.bf16.mxu0 %v3354_v0 }
  0xbc   :  { %2841 = vmatpush3.bf16.msra.mxu1 %v3627_v12 }
  0xbd   :  { %2848 = vmatprep.subr.bf16.mxu1 %v3354_v0 }
  0xbf   :  { %2614 = vmatmul.mubr.f32.vlgmr.msra.gmra.mrb[2].mxu1 %v3356_v1 }
  0xc0   :  { %2850 = vmatpush3.bf16.msra.mxu1 %v3621_v8  ;;  %2635 = vmatprep.mubr.msk.f32.mxu1 %vm3355_vm0, %v3356_v1 }
  0xc1   :  { %2851 = vmatprep.subr.bf16.mxu1 %v3354_v0 }
  0xc4   :  { %2853 = vmatpush3.bf16.msra.mxu1 %v3627_v12 }
  0xc5   :  { %2860 = vmatprep.subr.bf16.mxu1 %v3354_v0 }
 0x18a   :  { %v2604_v14 = vpop.f32.mrb[0].mxu1 }
 0x18b   :  { %v3647_v15 = vadd.f32 %v2604_v14, %v2444_v13  ;;  %v263_v16 = vpop.f32.mrb[1].mxu1 }
 0x18c   :  { %v3649_v17 = vadd.f32 %v2444_v13, %v263_v16 }
 0x192   :  { %v346_v18 = vpop.f32.mrb[2].mxu1 }
 0x193   :  { %v350_v19 = vadd.f32 %v346_v18, %v3649_v17  ;;  %v2615_v20 = vpop.f32.mrb[3].mxu1 }
 0x195   :  { %2983 = vtanh.f32 %v350_v19  ;;  %v2447_v22 = vmul.f32 -1.442695, %v350_v19 }
 0x197   :  { %2985 = vpow2.f32 %v2447_v22 }
 0x19f   :  { %v2984_v21 = vpop.eup %2983 }
 0x1a0   :  { %360 = vrot.lane.b32.xlu0 %v2984_v21, %s3357_s23 }
 0x1a1   :  { %v2986_v23 = vpop.eup %2985 }
 0x1a2   :  { %v354_v24 = vadd.f32 1.0, %v2986_v23 }
 0x1a4   :  { %2987 = vrcp.f32 %v354_v24 }
 0x1ae   :  { %v2988_v25 = vpop.eup %2987 }
 0x1af   :  { %v358_v28 = vmul.f32 0.0, %v2988_v25 }
 0x212   :  { %v361_v26 = vpop.permute.xlu0 %360 }
 0x213   :  { %v363_v27 = vmul.f32 %v2988_v25, %v361_v26 }
 0x215   :  { %365 = vrot.lane.b32.xlu0 %v363_v27, %s3358_s3 }
 0x287   :  { %v366_v29 = vpop.permute.xlu0 %365 }
 0x288   :  { %v368_v30 = vadd.f32 %v366_v29, %v358_v28 }
 0x28a   :  { %2989 = vtanh.f32 %v368_v30  ;;  %v462_v46 = vrot.slane %v368_v30, 6 }
 0x294   :  { %v2990_v31 = vpop.eup %2989 }
 0x295   :  { %371 = vrot.lane.b32.xlu1 %v2990_v31, %s3357_s23 }
 0x307   :  { %v372_v32 = vpop.permute.xlu1 %371 }
 0x308   :  { %v374_v33 = vmul.f32 %v2988_v25, %v372_v32 }
 0x30a   :  { %376 = vrot.lane.b32.xlu1 %v374_v33, %s3358_s3 }
 0x37c   :  { %v377_v34 = vpop.permute.xlu1 %376 }
 0x37d   :  { %2625 = vmatmul.mubr.msk.f32.vlgmr.msra.gmra.mrb[0].mxu0 %vm276_vm2, %v377_v34 }
 0x37e   :  { %2856 = vmatpush3.bf16.msra.mxu0 %v3621_v8  ;;  %2646 = vmatprep.mubr.msk.f32.mxu0 %vm3355_vm0, %v3356_v1 }
 0x37f   :  { %2857 = vmatprep.subr.bf16.mxu0 %v3354_v0 }
 0x382   :  { %2859 = vmatpush3.bf16.msra.mxu0 %v3627_v12 }
 0x383   :  { %2866 = vmatprep.subr.bf16.mxu0 %v3354_v0 }
 0x450   :  { %v446_v35 = vpop.f32.mrb[0].mxu0 }
 0x451   :  { %v451_v36 = vrot.slane %v446_v35, 6  ;;  %v2626_v37 = vpop.f32.mrb[1].mxu0 }
 0x453   :  { %v453_v38 = vadd.f32 %v451_v36, %v3649_v17 }
 0x455   :  { %2991 = vtanh.f32 %v453_v38  ;;  %v2449_v40 = vmul.f32 -1.442695, %v453_v38 }
 0x457   :  { %2993 = vpow2.f32 %v2449_v40 }
 0x45f   :  { %v2992_v39 = vpop.eup %2991 }
 0x460   :  { %466 = vrot.lane.b32.xlu0 %v2992_v39, %s3357_s23 }
 0x461   :  { %v2994_v41 = vpop.eup %2993 }
 0x462   :  { %v457_v42 = vadd.f32 1.0, %v2994_v41 }
 0x464   :  { %2995 = vrcp.f32 %v457_v42 }
 0x46e   :  { %v2996_v43 = vpop.eup %2995 }
 0x46f   :  { %v464_v47 = vmul.f32 %v2996_v43, %v462_v46 }
 0x4d2   :  { %v467_v44 = vpop.permute.xlu0 %466 }
 0x4d3   :  { %v469_v45 = vmul.f32 %v2996_v43, %v467_v44 }
 0x4d5   :  { %471 = vrot.lane.b32.xlu1 %v469_v45, %s3358_s3 }
 0x547   :  { %v472_v48 = vpop.permute.xlu1 %471 }
 0x548   :  { %v474_v49 = vadd.f32 %v472_v48, %v464_v47 }
 0x54a   :  { %2997 = vtanh.f32 %v474_v49  ;;  %v569_v4 = vrot.slane %v474_v49, 6 }
 0x554   :  { %v2998_v50 = vpop.eup %2997 }
 0x555   :  { %477 = vrot.lane.b32.xlu0 %v2998_v50, %s3357_s23 }
 0x5c7   :  { %v478_v51 = vpop.permute.xlu0 %477 }
 0x5c8   :  { %v480_v52 = vmul.f32 %v2996_v43, %v478_v51 }
 0x5ca   :  { %v482_v53 = vrot.slane %v480_v52, 2 }
 0x5cc   :  { %483 = vrot.lane.b32.xlu1 %v482_v53, %s3358_s3 }
 0x63e   :  { %v484_v54 = vpop.permute.xlu1 %483 }
 0x63f   :  { %2636 = vmatmul.mubr.msk.f32.vlgmr.msra.gmra.mrb[4].mxu1 %vm276_vm2, %v484_v54 }
 0x640   :  { %2862 = vmatpush3.bf16.msra.mxu1 %v3621_v8  ;;  %2657 = vmatprep.mubr.msk.f32.mxu1 %vm3355_vm0, %v3356_v1 }
 0x641   :  { %2863 = vmatprep.subr.bf16.mxu1 %v3354_v0 }
 0x644   :  { %2865 = vmatpush3.bf16.msra.mxu1 %v3627_v12 }
 0x645   :  { %2872 = vmatprep.subr.bf16.mxu1 %v3354_v0 }
 0x712   :  { %v553_v55 = vpop.f32.mrb[4].mxu1 }
 0x713   :  { %v558_v56 = vrot.slane %v553_v55, 4  ;;  %v2637_v57 = vpop.f32.mrb[5].mxu1 }
 0x715   :  { %v560_v58 = vadd.f32 %v558_v56, %v3649_v17 }
 0x717   :  { %2999 = vtanh.f32 %v560_v58  ;;  %v2451_v60 = vmul.f32 -1.442695, %v560_v58 }
 0x719   :  { %3001 = vpow2.f32 %v2451_v60 }
 0x721   :  { %v3000_v59 = vpop.eup %2999 }
 0x722   :  { %573 = vrot.lane.b32.xlu0 %v3000_v59, %s3357_s23 }
 0x723   :  { %v3002_v61 = vpop.eup %3001 }
 0x724   :  { %v564_v62 = vadd.f32 1.0, %v3002_v61 }
 0x726   :  { %3003 = vrcp.f32 %v564_v62 }
 0x730   :  { %v3004_v63 = vpop.eup %3003 }
 0x731   :  { %v571_v5 = vmul.f32 %v3004_v63, %v569_v4 }
 0x794   :  { %v574_v2 = vpop.permute.xlu0 %573 }
 0x795   :  { %v576_v3 = vmul.f32 %v3004_v63, %v574_v2 }
 0x797   :  { %578 = vrot.lane.b32.xlu1 %v576_v3, %s3358_s3 }
 0x809   :  { %v579_v6 = vpop.permute.xlu1 %578 }
 0x80a   :  { %v581_v7 = vadd.f32 %v579_v6, %v571_v5 }
 0x80c   :  { %3005 = vtanh.f32 %v581_v7  ;;  %v676_v28 = vrot.slane %v581_v7, 6 }
 0x816   :  { %v3006_v9 = vpop.eup %3005 }
 0x817   :  { %584 = vrot.lane.b32.xlu0 %v3006_v9, %s3357_s23 }
 0x889   :  { %v585_v10 = vpop.permute.xlu0 %584 }
 0x88a   :  { %v587_v11 = vmul.f32 %v3004_v63, %v585_v10 }
 0x88c   :  { %v589_v13 = vrot.slane %v587_v11, 4 }
 0x88e   :  { %590 = vrot.lane.b32.xlu1 %v589_v13, %s3358_s3 }
 0x900   :  { %v591_v14 = vpop.permute.xlu1 %590 }
 0x901   :  { %2647 = vmatmul.mubr.msk.f32.vlgmr.msra.gmra.mrb[2].mxu0 %vm276_vm2, %v591_v14 }
 0x902   :  { %2868 = vmatpush3.bf16.msra.mxu0 %v3621_v8  ;;  %2668 = vmatprep.mubr.msk.f32.mxu0 %vm3355_vm0, %v3356_v1 }
 0x903   :  { %2869 = vmatprep.subr.bf16.mxu0 %v3354_v0 }
 0x906   :  { %2871 = vmatpush3.bf16.msra.mxu0 %v3627_v12 }
 0x907   :  { %2878 = vmatprep.subr.bf16.mxu0 %v3354_v0 }
 0x9d4   :  { %v660_v16 = vpop.f32.mrb[2].mxu0 }
 0x9d5   :  { %v665_v18 = vrot.slane %v660_v16, 2  ;;  %v2648_v19 = vpop.f32.mrb[3].mxu0 }
 0x9d7   :  { %v667_v20 = vadd.f32 %v665_v18, %v3649_v17 }
 0x9d9   :  { %3007 = vtanh.f32 %v667_v20  ;;  %v2453_v22 = vmul.f32 -1.442695, %v667_v20 }
 0x9db   :  { %3009 = vpow2.f32 %v2453_v22 }
 0x9e3   :  { %v3008_v21 = vpop.eup %3007 }
 0x9e4   :  { %680 = vrot.lane.b32.xlu0 %v3008_v21, %s3357_s23 }
 0x9e5   :  { %v3010_v23 = vpop.eup %3009 }
 0x9e6   :  { %v671_v24 = vadd.f32 1.0, %v3010_v23 }
 0x9e8   :  { %3011 = vrcp.f32 %v671_v24 }
 0x9f2   :  { %v3012_v25 = vpop.eup %3011 }
 0x9f3   :  { %v678_v29 = vmul.f32 %v3012_v25, %v676_v28 }
 0xa56   :  { %v681_v26 = vpop.permute.xlu0 %680 }
 0xa57   :  { %v683_v27 = vmul.f32 %v3012_v25, %v681_v26 }
 0xa59   :  { %685 = vrot.lane.b32.xlu1 %v683_v27, %s3358_s3 }
 0xacb   :  { %v686_v30 = vpop.permute.xlu1 %685 }
 0xacc   :  { %v688_v31 = vadd.f32 %v686_v30, %v678_v29  ;;  %v1208_v29 = vld [vmem:[#allocation11] sm:$0xff]  ;;  %v1209_v30 = vld [vmem:[#allocation11 + $0x8] sm:$0xf] }
 0xace   :  { %3013 = vtanh.f32 %v688_v31  ;;  %v780_v46 = vrot.slane %v688_v31, 6  ;;  %v2890_v31 = vpack.c.bf16 %v1209_v30, %v1208_v29 }
 0xad8   :  { %v3014_v17 = vpop.eup %3013 }
 0xad9   :  { %691 = vrot.lane.b32.xlu0 %v3014_v17, %s3357_s23 }
 0xb4b   :  { %v692_v32 = vpop.permute.xlu0 %691 }
 0xb4c   :  { %v694_v33 = vmul.f32 %v3012_v25, %v692_v32 }
 0xb4e   :  { %v696_v34 = vrot.slane %v694_v33, 6 }
 0xb50   :  { %697 = vrot.lane.b32.xlu1 %v696_v34, %s3358_s3 }
 0xbc2   :  { %v698_v35 = vpop.permute.xlu1 %697 }
 0xbc3   :  { %2658 = vmatmul.mubr.msk.f32.vlgmr.msra.gmra.mrb[6].mxu1 %vm276_vm2, %v698_v35  ;;  %v1206_v35 = vld [vmem:[#allocation10] sm:$0xff] }
 0xbc4   :  { %2874 = vmatpush3.bf16.msra.mxu1 %v3621_v8  ;;  %2679 = vmatprep.mubr.msk.f32.mxu1 %vm3355_vm0, %v3356_v1 }
 0xbc5   :  { %2875 = vmatprep.subr.bf16.mxu1 %v3354_v0 }
 0xbc8   :  { %2877 = vmatpush3.bf16.msra.mxu1 %v3627_v12 }
 0xbc9   :  { %2884 = vmatprep.subr.bf16.mxu1 %v3354_v0 }
 0xc96   :  { %v767_v36 = vpop.f32.mrb[6].mxu1 }
 0xc97   :  { %v771_v37 = vadd.f32 %v767_v36, %v3647_v15  ;;  %v2659_v38 = vpop.f32.mrb[7].mxu1  ;;  %v1303_v36 = vld [vmem:[#allocation13] sm:$0xff] }
 0xc99   :  { %3015 = vtanh.f32 %v771_v37  ;;  %v2455_v40 = vmul.f32 -1.442695, %v771_v37  ;;  %v1304_v37 = vld [vmem:[#allocation13 + $0x8] sm:$0xff] }
 0xc9b   :  { %3017 = vpow2.f32 %v2455_v40  ;;  %v3727_v40 = vpack.c.bf16 %v1304_v37, %v1303_v36 }
 0xca3   :  { %v3016_v39 = vpop.eup %3015 }
 0xca4   :  { %784 = vrot.lane.b32.xlu0 %v3016_v39, %s3357_s23  ;;  %v1207_v39 = vld [vmem:[#allocation10 + $0x8] sm:$0xff] }
 0xca5   :  { %v3018_v41 = vpop.eup %3017 }
 0xca6   :  { %v775_v42 = vadd.f32 1.0, %v3018_v41  ;;  %v1305_v41 = vld [vmem:[#allocation13 + $0x10] sm:$0xff] }
 0xca8   :  { %3019 = vrcp.f32 %v775_v42  ;;  %v1306_v42 = vld [vmem:[#allocation13 + $0x18] sm:$0xff] }
 0xcb2   :  { %v3020_v43 = vpop.eup %3019 }
 0xcb3   :  { %v782_v47 = vmul.f32 %v3020_v43, %v780_v46 }
 0xd16   :  { %v785_v44 = vpop.permute.xlu0 %784 }
 0xd17   :  { %v787_v45 = vmul.f32 %v3020_v43, %v785_v44 }
 0xd19   :  { %789 = vrot.lane.b32.xlu1 %v787_v45, %s3358_s3 }
 0xd8b   :  { %v790_v48 = vpop.permute.xlu1 %789 }
 0xd8c   :  { %v792_v49 = vadd.f32 %v790_v48, %v782_v47  ;;  %v2464_v47 = vld [vmem:[%s3908_s9] ss:$0 sm:$0xff] }
 0xd8e   :  { %3021 = vtanh.f32 %v792_v49 }
 0xd98   :  { %v3022_v50 = vpop.eup %3021 }
 0xd99   :  { %795 = vrot.lane.b32.xlu0 %v3022_v50, %s3357_s23 }
 0xe0b   :  { %v796_v51 = vpop.permute.xlu0 %795 }
 0xe0c   :  { %v798_v52 = vmul.f32 %v3020_v43, %v796_v51  ;;  %v3731_v43 = vpack.c.bf16 %v1306_v42, %v1305_v41 }
 0xe0e   :  { %800 = vrot.lane.b32.xlu1 %v798_v52, %s3358_s3 }
 0xe80   :  { %v801_v53 = vpop.permute.xlu1 %800 }
 0xe81   :  { %2669 = vmatmul.mubr.msk.f32.vlgmr.msra.gmra.mrb[4].mxu0 %vm276_vm2, %v801_v53 }
 0xe82   :  { %2880 = vmatpush3.bf16.msra.mxu0 %v3621_v8  ;;  %2690 = vmatprep.mubr.msk.f32.mxu0 %vm3355_vm0, %v3356_v1 }
 0xe83   :  { %2881 = vmatprep.subr.bf16.mxu0 %v3354_v0 }
 0xe86   :  { %2883 = vmatpush3.bf16.msra.mxu0 %v3627_v12  ;;  %v886_v12 = vrot.slane %v792_v49, 6 }
 0xe87   :  { %2892 = vmatprep.subr.msk.bf16.mxu0 %vm2891_vm5, %v2890_v31 }
 0xf54   :  { %v870_v54 = vpop.f32.mrb[4].mxu0 }
 0xf55   :  { %v875_v55 = vrot.slane %v870_v54, 6  ;;  %v2670_v56 = vpop.f32.mrb[5].mxu0 }
 0xf57   :  { %v877_v57 = vadd.f32 %v875_v55, %v3647_v15 }
 0xf59   :  { %3023 = vtanh.f32 %v877_v57  ;;  %v2457_v59 = vmul.f32 -1.442695, %v877_v57 }
 0xf5b   :  { %3025 = vpow2.f32 %v2457_v59 }
 0xf63   :  { %v3024_v58 = vpop.eup %3023 }
 0xf64   :  { %890 = vrot.lane.b32.xlu0 %v3024_v58, %s3357_s23 }
 0xf65   :  { %v3026_v60 = vpop.eup %3025 }
 0xf66   :  { %v881_v8 = vadd.f32 1.0, %v3026_v60 }
 0xf68   :  { %3027 = vrcp.f32 %v881_v8 }
 0xf72   :  { %v3028_v61 = vpop.eup %3027 }
 0xf73   :  { %v888_v2 = vmul.f32 %v3028_v61, %v886_v12 }
 0xfd6   :  { %v891_v62 = vpop.permute.xlu0 %890 }
 0xfd7   :  { %v893_v63 = vmul.f32 %v3028_v61, %v891_v62 }
 0xfd9   :  { %895 = vrot.lane.b32.xlu1 %v893_v63, %s3358_s3 }
0x104b   :  { %v896_v3 = vpop.permute.xlu1 %895 }
0x104c   :  { %v898_v4 = vadd.f32 %v896_v3, %v888_v2 }
0x104e   :  { %3029 = vtanh.f32 %v898_v4  ;;  %v993_v25 = vrot.slane %v898_v4, 6 }
0x1058   :  { %v3030_v5 = vpop.eup %3029 }
0x1059   :  { %901 = vrot.lane.b32.xlu0 %v3030_v5, %s3357_s23 }
0x10cb   :  { %v902_v6 = vpop.permute.xlu0 %901 }
0x10cc   :  { %v904_v7 = vmul.f32 %v3028_v61, %v902_v6 }
0x10ce   :  { %v906_v9 = vrot.slane %v904_v7, 2 }
0x10d0   :  { %907 = vrot.lane.b32.xlu1 %v906_v9, %s3358_s3 }
0x1142   :  { %v908_v10 = vpop.permute.xlu1 %907 }
0x1143   :  { %2680 = vmatmul.mubr.msk.f32.vlgmr.msra.gmra.mrb[8].mxu1 %vm276_vm2, %v908_v10 }
0x1144   :  { %2701 = vmatprep.mubr.msk.f32.mxu1 %vm3355_vm0, %v3356_v1 }
0x1216   :  { %v977_v11 = vpop.f32.mrb[8].mxu1 }
0x1217   :  { %v982_v13 = vrot.slane %v977_v11, 4  ;;  %v2681_v14 = vpop.f32.mrb[9].mxu1 }
0x1219   :  { %v984_v16 = vadd.f32 %v982_v13, %v3647_v15 }
0x121b   :  { %3031 = vtanh.f32 %v984_v16  ;;  %v2459_v19 = vmul.f32 -1.442695, %v984_v16  ;;  %v1119_v16 = vld [vmem:[#allocation8] sm:$0xff] }
0x121d   :  { %3033 = vpow2.f32 %v2459_v19  ;;  %v1121_v19 = vld [vmem:[#allocation8 + $0x10] sm:$0xff] }
0x1225   :  { %v3032_v18 = vpop.eup %3031 }
0x1226   :  { %997 = vrot.lane.b32.xlu0 %v3032_v18, %s3357_s23  ;;  %v1120_v18 = vld [vmem:[#allocation8 + $0x8] sm:$0xff] }
0x1227   :  { %v3034_v20 = vpop.eup %3033 }
0x1228   :  { %v988_v21 = vadd.f32 1.0, %v3034_v20  ;;  %v2885_v20 = vpack.c.bf16 %v1120_v18, %v1119_v16 }
0x122a   :  { %3035 = vrcp.f32 %v988_v21  ;;  %v1122_v21 = vld [vmem:[#allocation8 + $0x18] sm:$0xff]  ;;  %2886 = vmatpush3.bf16.msra.mxu1 %v2885_v20 }
0x122b   :  { %2887 = vmatprep.subr.bf16.mxu1 %v3354_v0 }
0x1234   :  { %v3036_v22 = vpop.eup %3035 }
0x1235   :  { %v995_v26 = vmul.f32 %v3036_v22, %v993_v25 }
0x1298   :  { %v998_v23 = vpop.permute.xlu0 %997 }
0x1299   :  { %v1000_v24 = vmul.f32 %v3036_v22, %v998_v23 }
0x129b   :  { %1002 = vrot.lane.b32.xlu1 %v1000_v24, %s3358_s3 }
0x130d   :  { %v1003_v27 = vpop.permute.xlu1 %1002 }
0x130e   :  { %v3721_v28 = vadd.f32 %v1003_v27, %v995_v26 }
0x1310   :  { %3037 = vtanh.f32 %v3721_v28  ;;  %v1100_v5 = vrot.slane %v3721_v28, 6 }
0x131a   :  { %v3038_v17 = vpop.eup %3037 }
0x131b   :  { %1008 = vrot.lane.b32.xlu0 %v3038_v17, %s3357_s23 }
0x138d   :  { %v1009_v32 = vpop.permute.xlu0 %1008 }
0x138e   :  { %v1011_v33 = vmul.f32 %v3036_v22, %v1009_v32  ;;  %v2888_v22 = vpack.c.bf16 %v1122_v21, %v1121_v19 }
0x1390   :  { %v1013_v34 = vrot.slane %v1011_v33, 4  ;;  %2889 = vmatpush3.bf16.msra.mxu1 %v2888_v22 }
0x1391   :  { %2902 = vmatprep.subr.bf16.mxu1 %v3354_v0 }
0x1392   :  { %1014 = vrot.lane.b32.xlu1 %v1013_v34, %s3358_s3 }
0x1404   :  { %v1015_v38 = vpop.permute.xlu1 %1014 }
0x1405   :  { %2691 = vmatmul.mubr.msk.f32.vlgmr.msra.gmra.mrb[6].mxu0 %vm276_vm2, %v1015_v38 }
0x1406   :  { %2895 = vmatpush3.bf16.msk.msra.mxu0 %vm2891_vm5, %v2890_v31  ;;  %2708 = vmatprep.mubr.msk.f32.mxu0 %vm1217_vm6, %v1206_v35 }
0x1407   :  { %2896 = vmatprep.subr.bf16.mxu0 %v3354_v0 }
0x1409   :  { %2709 = vmatmul.mubr.msk.f32.vlgmr.msra.gmra.mrb[8].mxu0 %vm1217_vm6, %v1207_v39 }
0x140a   :  { %2898 = vmatpush3.bf16.msra.mxu0 %v3727_v40  ;;  %2719 = vmatprep.mubr.msk.f32.mxu0 %vm3355_vm0, %v3356_v1 }
0x140b   :  { %2899 = vmatprep.subr.bf16.mxu0 %v3354_v0 }
0x140e   :  { %2901 = vmatpush3.bf16.msra.mxu0 %v3731_v43 }
0x140f   :  { %2908 = vmatprep.subr.bf16.mxu0 %v3354_v0 }
0x1411   :  { %2720 = vmatmul.mubr.f32.vlgmr.msra.gmra.mrb[10].mxu0 %v3356_v1 }
0x1412   :  { %2910 = vmatpush3.bf16.msra.mxu0 %v3727_v40  ;;  %2741 = vmatprep.mubr.msk.f32.mxu0 %vm3355_vm0, %v3356_v1 }
0x1413   :  { %2911 = vmatprep.subr.bf16.mxu0 %v3354_v0 }
0x1416   :  { %2913 = vmatpush3.bf16.msra.mxu0 %v3731_v43 }
0x1417   :  { %2920 = vmatprep.subr.bf16.mxu0 %v3354_v0 }
0x14d8   :  { %v1084_v44 = vpop.f32.mrb[6].mxu0 }
0x14d9   :  { %v1089_v45 = vrot.slane %v1084_v44, 2  ;;  %v2692_v46 = vpop.f32.mrb[7].mxu0 }
0x14db   :  { %v1091_v48 = vadd.f32 %v1089_v45, %v3647_v15 }
0x14dc   :  { %v2710_v49 = vpop.f32.mrb[8].mxu0 }
0x14dd   :  { %3039 = vtanh.f32 %v1091_v48  ;;  %v3749_v50 = vadd.f32 %v2710_v49, %v2464_v47  ;;  %v1294_v51 = vpop.f32.mrb[9].mxu0  ;;  %v2461_v58 = vmul.f32 -1.442695, %v1091_v48 }
0x14de   :  { %v3751_v52 = vadd.f32 %v2464_v47, %v1294_v51 }
0x14e4   :  { %v1373_v53 = vpop.f32.mrb[10].mxu0 }
0x14e5   :  { %v1377_v54 = vadd.f32 %v1373_v53, %v3751_v52  ;;  %v2721_v55 = vpop.f32.mrb[11].mxu0 }
0x14e7   :  { %v3040_v56 = vpop.eup %3039  ;;  %3041 = vtanh.f32 %v1377_v54  ;;  %v2468_v15 = vmul.f32 -1.442695, %v1377_v54 }
0x14e8   :  { %1104 = vrot.lane.b32.xlu0 %v3040_v56, %s3357_s23  ;;  %3043 = vpow2.f32 %v2461_v58 }
0x14e9   :  { %3045 = vpow2.f32 %v2468_v15 }
0x14f1   :  { %v3042_v57 = vpop.eup %3041 }
0x14f2   :  { %1387 = vrot.lane.b32.xlu1 %v3042_v57, %s3357_s23  ;;  %v3044_v59 = vpop.eup %3043 }
0x14f3   :  { %v1095_v60 = vadd.f32 1.0, %v3044_v59  ;;  %v3046_v8 = vpop.eup %3045 }
0x14f4   :  { %v1381_v61 = vadd.f32 1.0, %v3046_v8 }
0x14f5   :  { %3047 = vrcp.f32 %v1095_v60 }
0x14f6   :  { %3049 = vrcp.f32 %v1381_v61 }
0x14ff   :  { %v3048_v62 = vpop.eup %3047 }
0x1500   :  { %v3050_v2 = vpop.eup %3049  ;;  %v1102_v6 = vmul.f32 %v3048_v62, %v1100_v5 }
0x1501   :  { %v1385_v10 = vmul.f32 0.0, %v3050_v2 }
0x155a   :  { %v1105_v63 = vpop.permute.xlu0 %1104 }
0x155b   :  { %v1107_v12 = vmul.f32 %v3048_v62, %v1105_v63 }
0x155d   :  { %1109 = vrot.lane.b32.xlu0 %v1107_v12, %s3358_s3 }
0x1564   :  { %v1388_v3 = vpop.permute.xlu1 %1387 }
0x1565   :  { %v1390_v4 = vmul.f32 %v3050_v2, %v1388_v3 }
0x1567   :  { %1392 = vrot.lane.b32.xlu1 %v1390_v4, %s3358_s3 }
0x15cf   :  { %v1110_v7 = vpop.permute.xlu0 %1109 }
0x15d0   :  { %v1112_v9 = vadd.f32 %v1110_v7, %v1102_v6 }
0x15d2   :  { %3051 = vtanh.f32 %v1112_v9 }
0x15d9   :  { %v1393_v11 = vpop.permute.xlu1 %1392 }
0x15da   :  { %v1395_v13 = vadd.f32 %v1393_v11, %v1385_v10 }
0x15dc   :  { %v3052_v14 = vpop.eup %3051  ;;  %3053 = vtanh.f32 %v1395_v13  ;;  %v1489_v45 = vrot.slane %v1395_v13, 6 }
0x15dd   :  { %1115 = vrot.lane.b32.xlu0 %v3052_v14, %s3357_s23 }
0x15e6   :  { %v3054_v23 = vpop.eup %3053 }
0x15e7   :  { %1398 = vrot.lane.b32.xlu1 %v3054_v23, %s3357_s23 }
0x164f   :  { %v1116_v24 = vpop.permute.xlu0 %1115 }
0x1650   :  { %v1118_v25 = vmul.f32 %v3048_v62, %v1116_v24 }
0x1652   :  { %v1131_v26 = vrot.slane %v1118_v25, 6 }
0x1654   :  { %1132 = vrot.lane.b32.xlu0 %v1131_v26, %s3358_s3 }
0x1659   :  { %v1399_v27 = vpop.permute.xlu1 %1398 }
0x165a   :  { %v1401_v28 = vmul.f32 %v3050_v2, %v1399_v27 }
0x165c   :  { %1403 = vrot.lane.b32.xlu1 %v1401_v28, %s3358_s3 }
0x16c6   :  { %v1133_v29 = vpop.permute.xlu0 %1132 }
0x16c7   :  { %2702 = vmatmul.mubr.msk.f32.vlgmr.msra.gmra.mrb[10].mxu1 %vm276_vm2, %v1133_v29 }
0x16c8   :  { %2904 = vmatpush3.bf16.msra.mxu1 %v3727_v40  ;;  %2730 = vmatprep.mubr.msk.f32.mxu1 %vm3355_vm0, %v3356_v1 }
0x16c9   :  { %2905 = vmatprep.subr.bf16.mxu1 %v3354_v0 }
0x16cc   :  { %2907 = vmatpush3.bf16.msra.mxu1 %v3731_v43 }
0x16cd   :  { %2914 = vmatprep.subr.bf16.mxu1 %v3354_v0 }
0x16ce   :  { %v1404_v30 = vpop.permute.xlu1 %1403 }
0x16cf   :  { %2731 = vmatmul.mubr.msk.f32.vlgmr.msra.gmra.mrb[12].mxu1 %vm276_vm2, %v1404_v30 }
0x16d0   :  { %2916 = vmatpush3.bf16.msra.mxu1 %v3727_v40  ;;  %2752 = vmatprep.mubr.msk.f32.mxu1 %vm3355_vm0, %v3356_v1 }
0x16d1   :  { %2917 = vmatprep.subr.bf16.mxu1 %v3354_v0 }
0x16d4   :  { %2919 = vmatpush3.bf16.msra.mxu1 %v3731_v43 }
0x16d5   :  { %2926 = vmatprep.subr.bf16.mxu1 %v3354_v0 }
0x179a   :  { %v3779_v31 = vpop.f32.mrb[10].mxu1 }
0x179b   :  { %v2703_v17 = vpop.f32.mrb[11].mxu1 }
0x17a2   :  { %v1473_v32 = vpop.f32.mrb[12].mxu1 }
0x17a3   :  { %v1478_v33 = vrot.slane %v1473_v32, 6  ;;  %v2732_v34 = vpop.f32.mrb[13].mxu1 }
0x17a5   :  { %v1480_v35 = vadd.f32 %v1478_v33, %v3751_v52 }
0x17a7   :  { %3055 = vtanh.f32 %v1480_v35  ;;  %v2470_v37 = vmul.f32 -1.442695, %v1480_v35 }
0x17a9   :  { %3057 = vpow2.f32 %v2470_v37 }
0x17b1   :  { %v3056_v36 = vpop.eup %3055 }
0x17b2   :  { %1493 = vrot.lane.b32.xlu0 %v3056_v36, %s3357_s23 }
0x17b3   :  { %v3058_v38 = vpop.eup %3057 }
0x17b4   :  { %v1484_v39 = vadd.f32 1.0, %v3058_v38 }
0x17b6   :  { %3059 = vrcp.f32 %v1484_v39 }
0x17c0   :  { %v3060_v41 = vpop.eup %3059 }
0x17c1   :  { %v1491_v46 = vmul.f32 %v3060_v41, %v1489_v45 }
0x1824   :  { %v1494_v42 = vpop.permute.xlu0 %1493 }
0x1825   :  { %v1496_v44 = vmul.f32 %v3060_v41, %v1494_v42 }
0x1827   :  { %1498 = vrot.lane.b32.xlu1 %v1496_v44, %s3358_s3 }
0x1899   :  { %v1499_v47 = vpop.permute.xlu1 %1498 }
0x189a   :  { %v1501_v48 = vadd.f32 %v1499_v47, %v1491_v46 }
0x189c   :  { %3061 = vtanh.f32 %v1501_v48  ;;  %v1596_v2 = vrot.slane %v1501_v48, 6 }
0x18a6   :  { %v3062_v49 = vpop.eup %3061 }
0x18a7   :  { %1504 = vrot.lane.b32.xlu0 %v3062_v49, %s3357_s23 }
0x1919   :  { %v1505_v51 = vpop.permute.xlu0 %1504 }
0x191a   :  { %v1507_v53 = vmul.f32 %v3060_v41, %v1505_v51 }
0x191c   :  { %v1509_v54 = vrot.slane %v1507_v53, 2 }
0x191e   :  { %1510 = vrot.lane.b32.xlu1 %v1509_v54, %s3358_s3 }
0x1990   :  { %v1511_v55 = vpop.permute.xlu1 %1510 }
0x1991   :  { %2742 = vmatmul.mubr.msk.f32.vlgmr.msra.gmra.mrb[12].mxu0 %vm276_vm2, %v1511_v55 }
0x1992   :  { %2922 = vmatpush3.bf16.msra.mxu0 %v3727_v40  ;;  %2763 = vmatprep.mubr.msk.f32.mxu0 %vm3355_vm0, %v3356_v1 }
0x1993   :  { %2923 = vmatprep.subr.bf16.mxu0 %v3354_v0 }
0x1996   :  { %2925 = vmatpush3.bf16.msra.mxu0 %v3731_v43 }
0x1997   :  { %2932 = vmatprep.subr.bf16.mxu0 %v3354_v0 }
0x1a64   :  { %v1580_v56 = vpop.f32.mrb[12].mxu0 }
0x1a65   :  { %v1585_v57 = vrot.slane %v1580_v56, 4  ;;  %v2743_v58 = vpop.f32.mrb[13].mxu0 }
0x1a67   :  { %v1587_v15 = vadd.f32 %v1585_v57, %v3751_v52 }
0x1a69   :  { %3063 = vtanh.f32 %v1587_v15  ;;  %v2472_v60 = vmul.f32 -1.442695, %v1587_v15 }
0x1a6b   :  { %3065 = vpow2.f32 %v2472_v60 }
0x1a73   :  { %v3064_v59 = vpop.eup %3063 }
0x1a74   :  { %1600 = vrot.lane.b32.xlu0 %v3064_v59, %s3357_s23 }
0x1a75   :  { %v3066_v8 = vpop.eup %3065 }
0x1a76   :  { %v1591_v61 = vadd.f32 1.0, %v3066_v8 }
0x1a78   :  { %3067 = vrcp.f32 %v1591_v61 }
0x1a82   :  { %v3068_v62 = vpop.eup %3067 }
0x1a83   :  { %v1598_v3 = vmul.f32 %v3068_v62, %v1596_v2 }
0x1ae6   :  { %v1601_v63 = vpop.permute.xlu0 %1600 }
0x1ae7   :  { %v1603_v12 = vmul.f32 %v3068_v62, %v1601_v63 }
0x1ae9   :  { %1605 = vrot.lane.b32.xlu1 %v1603_v12, %s3358_s3 }
0x1b5b   :  { %v1606_v4 = vpop.permute.xlu1 %1605 }
0x1b5c   :  { %v1608_v5 = vadd.f32 %v1606_v4, %v1598_v3 }
0x1b5e   :  { %3069 = vtanh.f32 %v1608_v5  ;;  %v1703_v26 = vrot.slane %v1608_v5, 6 }
0x1b68   :  { %v3070_v6 = vpop.eup %3069 }
0x1b69   :  { %1611 = vrot.lane.b32.xlu0 %v3070_v6, %s3357_s23 }
0x1bdb   :  { %v1612_v7 = vpop.permute.xlu0 %1611 }
0x1bdc   :  { %v1614_v9 = vmul.f32 %v3068_v62, %v1612_v7 }
0x1bde   :  { %v1616_v10 = vrot.slane %v1614_v9, 4 }
0x1be0   :  { %1617 = vrot.lane.b32.xlu1 %v1616_v10, %s3358_s3 }
0x1c52   :  { %v1618_v11 = vpop.permute.xlu1 %1617 }
0x1c53   :  { %2753 = vmatmul.mubr.msk.f32.vlgmr.msra.gmra.mrb[14].mxu1 %vm276_vm2, %v1618_v11 }
0x1c54   :  { %2928 = vmatpush3.bf16.msra.mxu1 %v3727_v40  ;;  %2774 = vmatprep.mubr.msk.f32.mxu1 %vm3355_vm0, %v3356_v1 }
0x1c55   :  { %2929 = vmatprep.subr.bf16.mxu1 %v3354_v0 }
0x1c58   :  { %2931 = vmatpush3.bf16.msra.mxu1 %v3731_v43 }
0x1c59   :  { %2938 = vmatprep.subr.bf16.mxu1 %v3354_v0 }
0x1d26   :  { %v1687_v13 = vpop.f32.mrb[14].mxu1 }
0x1d27   :  { %v1692_v14 = vrot.slane %v1687_v13, 2  ;;  %v2754_v16 = vpop.f32.mrb[15].mxu1 }
0x1d29   :  { %v1694_v18 = vadd.f32 %v1692_v14, %v3751_v52 }
0x1d2b   :  { %3071 = vtanh.f32 %v1694_v18  ;;  %v2474_v20 = vmul.f32 -1.442695, %v1694_v18 }
0x1d2d   :  { %3073 = vpow2.f32 %v2474_v20 }
0x1d35   :  { %v3072_v19 = vpop.eup %3071 }
0x1d36   :  { %1707 = vrot.lane.b32.xlu0 %v3072_v19, %s3357_s23 }
0x1d37   :  { %v3074_v21 = vpop.eup %3073 }
0x1d38   :  { %v1698_v22 = vadd.f32 1.0, %v3074_v21 }
0x1d3a   :  { %3075 = vrcp.f32 %v1698_v22 }
0x1d44   :  { %v3076_v23 = vpop.eup %3075 }
0x1d45   :  { %v1705_v27 = vmul.f32 %v3076_v23, %v1703_v26 }
0x1da8   :  { %v1708_v24 = vpop.permute.xlu0 %1707 }
0x1da9   :  { %v1710_v25 = vmul.f32 %v3076_v23, %v1708_v24 }
0x1dab   :  { %1712 = vrot.lane.b32.xlu1 %v1710_v25, %s3358_s3 }
0x1e1d   :  { %v1713_v28 = vpop.permute.xlu1 %1712 }
0x1e1e   :  { %v1715_v29 = vadd.f32 %v1713_v28, %v1705_v27 }
0x1e20   :  { %3077 = vtanh.f32 %v1715_v29  ;;  %v1807_v46 = vrot.slane %v1715_v29, 6 }
0x1e2a   :  { %v3078_v52 = vpop.eup %3077 }
0x1e2b   :  { %1718 = vrot.lane.b32.xlu0 %v3078_v52, %s3357_s23 }
0x1e9d   :  { %v1719_v30 = vpop.permute.xlu0 %1718 }
0x1e9e   :  { %v1721_v17 = vmul.f32 %v3076_v23, %v1719_v30 }
0x1ea0   :  { %v1723_v32 = vrot.slane %v1721_v17, 6  ;;  %v2233_v17 = vld [vmem:[#allocation14] sm:$0xff] }
0x1ea2   :  { %1724 = vrot.lane.b32.xlu1 %v1723_v32, %s3358_s3  ;;  %v2234_v32 = vld [vmem:[#allocation14 + $0x8] sm:$0xff] }
0x1f14   :  { %v1725_v33 = vpop.permute.xlu1 %1724 }
0x1f15   :  { %2764 = vmatmul.mubr.msk.f32.vlgmr.msra.gmra.mrb[14].mxu0 %vm276_vm2, %v1725_v33  ;;  %v2951_v33 = vpack.c.bf16 %v2234_v32, %v2233_v17 }
0x1f16   :  { %2934 = vmatpush3.bf16.msra.mxu0 %v3727_v40  ;;  %2785 = vmatprep.mubr.msk.f32.mxu0 %vm3355_vm0, %v3356_v1 }
0x1f17   :  { %2935 = vmatprep.subr.bf16.mxu0 %v3354_v0 }
0x1f1a   :  { %2937 = vmatpush3.bf16.msra.mxu0 %v3731_v43 }
0x1f1b   :  { %2944 = vmatprep.subr.bf16.mxu0 %v3354_v0 }
0x1fe8   :  { %v1794_v34 = vpop.f32.mrb[14].mxu0 }
0x1fe9   :  { %v1798_v35 = vadd.f32 %v1794_v34, %v3749_v50  ;;  %v2765_v36 = vpop.f32.mrb[15].mxu0  ;;  %v2235_v34 = vld [vmem:[#allocation14 + $0x10] sm:$0xff] }
0x1feb   :  { %3079 = vtanh.f32 %v1798_v35  ;;  %v2476_v38 = vmul.f32 -1.442695, %v1798_v35  ;;  %v2236_v35 = vld [vmem:[#allocation14 + $0x18] sm:$0xff] }
0x1fed   :  { %3081 = vpow2.f32 %v2476_v38  ;;  %v2462_v38 = vld [vmem:[%s3904_s5] ss:$0 sm:$0xff] }
0x1ff5   :  { %v3080_v37 = vpop.eup %3079 }
0x1ff6   :  { %1811 = vrot.lane.b32.xlu0 %v3080_v37, %s3357_s23  ;;  %v2954_v37 = vpack.c.bf16 %v2236_v35, %v2235_v34 }
0x1ff7   :  { %v3082_v39 = vpop.eup %3081 }
0x1ff8   :  { %v1802_v41 = vadd.f32 1.0, %v3082_v39  ;;  %v1203_v39 = vadd.f32 %v2462_v38, %v3779_v31 }
0x1ffa   :  { %3083 = vrcp.f32 %v1802_v41 }
0x2004   :  { %v3084_v42 = vpop.eup %3083 }
0x2005   :  { %v1809_v47 = vmul.f32 %v3084_v42, %v1807_v46 }
0x2068   :  { %v1812_v44 = vpop.permute.xlu0 %1811 }
0x2069   :  { %v1814_v45 = vmul.f32 %v3084_v42, %v1812_v44 }
0x206b   :  { %1816 = vrot.lane.b32.xlu1 %v1814_v45, %s3358_s3 }
0x20dd   :  { %v1817_v48 = vpop.permute.xlu1 %1816 }
0x20de   :  { %v1819_v49 = vadd.f32 %v1817_v48, %v1809_v47 }
0x20e0   :  { %3085 = vtanh.f32 %v1819_v49 }
0x20ea   :  { %v3086_v51 = vpop.eup %3085 }
0x20eb   :  { %1822 = vrot.lane.b32.xlu0 %v3086_v51, %s3357_s23 }
0x215d   :  { %v1823_v53 = vpop.permute.xlu0 %1822 }
0x215e   :  { %v1825_v54 = vmul.f32 %v3084_v42, %v1823_v53 }
0x2160   :  { %1827 = vrot.lane.b32.xlu1 %v1825_v54, %s3358_s3 }
0x21d2   :  { %v1828_v55 = vpop.permute.xlu1 %1827 }
0x21d3   :  { %2775 = vmatmul.mubr.msk.f32.vlgmr.msra.gmra.mrb[16].mxu1 %vm276_vm2, %v1828_v55 }
0x21d4   :  { %2940 = vmatpush3.bf16.msra.mxu1 %v3727_v40  ;;  %2796 = vmatprep.mubr.msk.f32.mxu1 %vm3355_vm0, %v3356_v1 }
0x21d5   :  { %2941 = vmatprep.subr.bf16.mxu1 %v3354_v0 }
0x21d8   :  { %2943 = vmatpush3.bf16.msra.mxu1 %v3731_v43  ;;  %v1913_v43 = vrot.slane %v1819_v49, 6 }
0x21d9   :  { %2950 = vmatprep.subr.bf16.mxu1 %v3354_v0 }
0x22a6   :  { %v1897_v56 = vpop.f32.mrb[16].mxu1 }
0x22a7   :  { %v1902_v57 = vrot.slane %v1897_v56, 6  ;;  %v2776_v58 = vpop.f32.mrb[17].mxu1 }
0x22a9   :  { %v1904_v15 = vadd.f32 %v1902_v57, %v3749_v50 }
0x22ab   :  { %3087 = vtanh.f32 %v1904_v15  ;;  %v2478_v60 = vmul.f32 -1.442695, %v1904_v15  ;;  %v2146_v15 = vld [vmem:[%s3909_s10] sm:$0xff] }
0x22ad   :  { %3089 = vpow2.f32 %v2478_v60  ;;  %v2148_v60 = vld [vmem:[%s3909_s10 + $0x10] sm:$0xff] }
0x22b5   :  { %v3088_v59 = vpop.eup %3087 }
0x22b6   :  { %1917 = vrot.lane.b32.xlu0 %v3088_v59, %s3357_s23  ;;  %v2147_v59 = vld [vmem:[%s3909_s10 + $0x8] sm:$0xff] }
0x22b7   :  { %v3090_v40 = vpop.eup %3089 }
0x22b8   :  { %v1908_v8 = vadd.f32 1.0, %v3090_v40  ;;  %v2945_v40 = vpack.c.bf16 %v2147_v59, %v2146_v15 }
0x22ba   :  { %3091 = vrcp.f32 %v1908_v8  ;;  %v2149_v8 = vld [vmem:[%s3909_s10 + $0x18] sm:$0xff] }
0x22c4   :  { %v3092_v61 = vpop.eup %3091 }
0x22c5   :  { %v1915_v12 = vmul.f32 %v3092_v61, %v1913_v43 }
0x2328   :  { %v1918_v62 = vpop.permute.xlu0 %1917 }
0x2329   :  { %v1920_v63 = vmul.f32 %v3092_v61, %v1918_v62 }
0x232b   :  { %1922 = vrot.lane.b32.xlu1 %v1920_v63, %s3358_s3 }
0x239d   :  { %v1923_v2 = vpop.permute.xlu1 %1922 }
0x239e   :  { %v1925_v3 = vadd.f32 %v1923_v2, %v1915_v12  ;;  %v2317_v2 = vld [vmem:[#allocation16] sm:$0xff] }
0x23a0   :  { %3093 = vtanh.f32 %v1925_v3  ;;  %v2020_v24 = vrot.slane %v1925_v3, 6  ;;  %v2318_v3 = vld [vmem:[#allocation16 + $0x8] sm:$0xff] }
0x23aa   :  { %v3094_v4 = vpop.eup %3093 }
0x23ab   :  { %1928 = vrot.lane.b32.xlu0 %v3094_v4, %s3357_s23  ;;  %v2957_v4 = vpack.c.bf16 %v2318_v3, %v2317_v2 }
0x241d   :  { %v1929_v5 = vpop.permute.xlu0 %1928 }
0x241e   :  { %v1931_v6 = vmul.f32 %v3092_v61, %v1929_v5  ;;  %v2948_v61 = vpack.c.bf16 %v2149_v8, %v2148_v60 }
0x2420   :  { %v1933_v7 = vrot.slane %v1931_v6, 2  ;;  %v2319_v6 = vld [vmem:[#allocation16 + $0x10] sm:$0xff] }
0x2422   :  { %1934 = vrot.lane.b32.xlu1 %v1933_v7, %s3358_s3  ;;  %v2320_v7 = vld [vmem:[#allocation16 + $0x18] sm:$0xff] }
0x2494   :  { %v1935_v9 = vpop.permute.xlu1 %1934 }
0x2495   :  { %2786 = vmatmul.mubr.msk.f32.vlgmr.msra.gmra.mrb[16].mxu0 %vm276_vm2, %v1935_v9  ;;  %v2960_v9 = vpack.c.bf16 %v2320_v7, %v2319_v6 }
0x2496   :  { %2807 = vmatprep.mubr.msk.f32.mxu0 %vm3355_vm0, %v3356_v1  ;;  %2946 = vmatpush3.bf16.msra.mxu0 %v2945_v40 }
0x2497   :  { %2947 = vmatprep.subr.bf16.mxu0 %v3354_v0 }
0x249a   :  { %2949 = vmatpush3.bf16.msra.mxu0 %v2948_v61 }
0x249b   :  { %2956 = vmatprep.subr.bf16.mxu0 %v3354_v0 }
0x2568   :  { %v2004_v10 = vpop.f32.mrb[16].mxu0 }
0x2569   :  { %v2009_v11 = vrot.slane %v2004_v10, 4  ;;  %v2787_v13 = vpop.f32.mrb[17].mxu0  ;;  %v2483_v10 = vld [vmem:[%s3910_s11] ss:$0 sm:$0xff]  ;;  %s3361_s11 = smov 120  }
0x256b   :  { %v2011_v14 = vadd.f32 %v2009_v11, %v3749_v50 }
0x256d   :  { %3095 = vtanh.f32 %v2011_v14  ;;  %v2480_v18 = vmul.f32 -1.442695, %v2011_v14 }
0x256f   :  { %3097 = vpow2.f32 %v2480_v18 }
0x2577   :  { %v3096_v16 = vpop.eup %3095 }
0x2578   :  { %2024 = vrot.lane.b32.xlu0 %v3096_v16, %s3357_s23  ;;  %v2485_v16 = vld [vmem:[%s3912_s13] ss:$0 sm:$0xff]  ;;  %s3363_s13 = smov [#allocation17]  }
0x2579   :  { %v3098_v19 = vpop.eup %3097 }
0x257a   :  { %v2015_v20 = vadd.f32 1.0, %v3098_v19 }
0x257c   :  { %3099 = vrcp.f32 %v2015_v20 }
0x2586   :  { %v3100_v21 = vpop.eup %3099 }
0x2587   :  { %v2022_v25 = vmul.f32 %v3100_v21, %v2020_v24 }
0x25ea   :  { %v2025_v22 = vpop.permute.xlu0 %2024 }
0x25eb   :  { %v2027_v23 = vmul.f32 %v3100_v21, %v2025_v22  ;;  %v2489_v22 = vld [vmem:[%s3915_s16] ss:$0 sm:$0xff] }
0x25ed   :  { %2029 = vrot.lane.b32.xlu1 %v2027_v23, %s3358_s3 }
0x265f   :  { %v2030_v26 = vpop.permute.xlu1 %2029 }
0x2660   :  { %v2032_v27 = vadd.f32 %v2030_v26, %v2022_v25 }
0x2662   :  { %3101 = vtanh.f32 %v2032_v27  ;;  %v2127_v56 = vrot.slane %v2032_v27, 6 }
0x266c   :  { %v3102_v28 = vpop.eup %3101 }
0x266d   :  { %2035 = vrot.lane.b32.xlu0 %v3102_v28, %s3357_s23 }
0x26df   :  { %v2036_v29 = vpop.permute.xlu0 %2035 }
0x26e0   :  { %v2038_v52 = vmul.f32 %v3100_v21, %v2036_v29 }
0x26e2   :  { %v2040_v30 = vrot.slane %v2038_v52, 4 }
0x26e4   :  { %2041 = vrot.lane.b32.xlu1 %v2040_v30, %s3358_s3 }
0x2756   :  { %v2042_v36 = vpop.permute.xlu1 %2041 }
0x2757   :  { %2797 = vmatmul.mubr.msk.f32.vlgmr.msra.gmra.mrb[18].mxu1 %vm276_vm2, %v2042_v36 }
0x2758   :  { %2952 = vmatpush3.bf16.msra.mxu1 %v2951_v33  ;;  %2818 = vmatprep.mubr.msk.f32.mxu1 %vm3355_vm0, %v3356_v1 }
0x2759   :  { %2953 = vmatprep.subr.bf16.mxu1 %v3354_v0 }
0x275c   :  { %2955 = vmatpush3.bf16.msra.mxu1 %v2954_v37 }
0x275f   :  { %2819 = vmatmul.mubr.msk.f32.vlgmr.msra.gmra.mrb[20].mxu1 %vm276_vm2, %v1203_v39 }
0x282a   :  { %v2111_v41 = vpop.f32.mrb[18].mxu1 }
0x282b   :  { %v2116_v42 = vrot.slane %v2111_v41, 2  ;;  %v2798_v44 = vpop.f32.mrb[19].mxu1 }
0x282d   :  { %v2118_v45 = vadd.f32 %v2116_v42, %v3749_v50 }
0x282f   :  { %3103 = vtanh.f32 %v2118_v45  ;;  %v2482_v49 = vmul.f32 -1.442695, %v2118_v45 }
0x2831   :  { %3105 = vpow2.f32 %v2482_v49 }
0x2832   :  { %v2313_v46 = vpop.f32.mrb[20].mxu1 }
0x2833   :  { %v2820_v47 = vpop.f32.mrb[21].mxu1  ;;  %v2314_v18 = vadd.f32 %v2485_v16, %v2313_v46 }
0x2839   :  { %v3104_v48 = vpop.eup %3103 }
0x283a   :  { %2131 = vrot.lane.b32.xlu0 %v3104_v48, %s3357_s23 }
0x283b   :  { %v3106_v51 = vpop.eup %3105 }
0x283c   :  { %v2122_v53 = vadd.f32 1.0, %v3106_v51 }
0x283e   :  { %3107 = vrcp.f32 %v2122_v53 }
0x2848   :  { %v3108_v54 = vpop.eup %3107 }
0x2849   :  { %v2129_v57 = vmul.f32 %v3108_v54, %v2127_v56 }
0x28ac   :  { %v2132_v31 = vpop.permute.xlu0 %2131 }
0x28ad   :  { %v2134_v55 = vmul.f32 %v3108_v54, %v2132_v31 }
0x28af   :  { %2136 = vrot.lane.b32.xlu1 %v2134_v55, %s3358_s3 }
0x2921   :  { %v2137_v58 = vpop.permute.xlu1 %2136 }
0x2922   :  { %v2139_v50 = vadd.f32 %v2137_v58, %v2129_v57 }
0x2924   :  { %3109 = vtanh.f32 %v2139_v50 }
0x292e   :  { %v3110_v62 = vpop.eup %3109 }
0x292f   :  { %2142 = vrot.lane.b32.xlu0 %v3110_v62, %s3357_s23 }
0x29a1   :  { %v2143_v63 = vpop.permute.xlu0 %2142 }
0x29a2   :  { %v2145_v43 = vmul.f32 %v3108_v54, %v2143_v63 }
0x29a4   :  { %v2158_v12 = vrot.slane %v2145_v43, 6 }
0x29a6   :  { %2159 = vrot.lane.b32.xlu1 %v2158_v12, %s3358_s3 }
0x2a18   :  { %v2160_v5 = vpop.permute.xlu1 %2159 }
0x2a19   :  { %2808 = vmatmul.mubr.msk.f32.vlgmr.msra.gmra.mrb[18].mxu0 %vm276_vm2, %v2160_v5 }
0x2a1a   :  { %2958 = vmatpush3.bf16.msra.mxu0 %v2957_v4  ;;  %2829 = vmatprep.mubr.msk.f32.mxu0 %vm3355_vm0, %v3356_v1 }
0x2a1b   :  { %2959 = vmatprep.subr.bf16.mxu0 %v3354_v0  ;;  %v2487_v0 = vld [vmem:[%s3914_s15] ss:$0 sm:$0xff]  ;;  %s2431_s15 = sshll.u32 %s3363_s13, 4  ;;  %s2432_s15 = int_to_ptr.vmem [resolvable:$true] %s2431_s15 }
0x2a1c   :  { %s3309_s12 = scalar_lea.vmem %s2432_s15, 32  ;;  %p3314_p3 = scmp.lt.s32.totalorder %s2432_s15, %s2432_s15 }
0x2a1d   :  { %p3310_p2 = scmp.ne.s32.totalorder %s2432_s15, %s3309_s12  ;;  %p3315_p4 = scmp.lt.s32.totalorder %s3309_s12, %s3309_s12 }
0x2a1e   :  { %2961 = vmatpush3.bf16.msra.mxu0 %v2960_v9 }
0x2a1f   :  { %p3316_p5 = por %p3315_p4, %p3314_p3 }
0x2a21   :  { %p3317_p6 = pnand %p3316_p5, %p3310_p2 }
0x2aec   :  { %v2229_v11 = vpop.f32.mrb[18].mxu0 }
0x2aed   :  { %v2230_v13 = vadd.f32 %v2483_v10, %v2229_v11  ;;  %v2809_v14 = vpop.f32.mrb[19].mxu0 }
0x2aef   :  { %2830 = vmatmul.mubr.msk.f32.vlgmr.msra.gmra.mrb[20].mxu0 %vm276_vm2, %v2230_v13 }
0x2bc2   :  { %v2397_v1 = vpop.f32.mrb[20].mxu0 }
0x2bc3   :  { %v2398_v19 = vadd.f32 %v2487_v0, %v2397_v1  ;;  %v2831_v20 = vpop.f32.mrb[21].mxu0 }
0x2bc5   :  { %v2401_v21 = vmul.f32 %v2398_v19, %v2314_v18 }
0x2bc7   :  { %2415 = vrot.lane.b32.xlu1 %v2401_v21, %s3360_s0  ;;  %2411 = vrot.lane.b32.xlu0 %v2401_v21, %s3361_s11  ;;  %v2409_v23 = vadd.f32 %v2489_v22, %v2401_v21 }
0x2bcb   :  { %2419 = vrot.lane.b32.xlu0 %v2401_v21, %s3362_s17 }
0x2c39   :  { %v2412_v24 = vpop.permute.xlu0 %2411  ;;  %v2416_v26 = vpop.permute.xlu1 %2415 }
0x2c3a   :  { %v2414_v25 = vadd.f32 %v2412_v24, %v2409_v23 }
0x2c3c   :  { %v2418_v27 = vadd.f32 %v2416_v26, %v2414_v25 }
0x2c3d   :  { %v2420_v28 = vpop.permute.xlu0 %2419 }
0x2c3e   :  { %v2422_v29 = vadd.f32 %v2420_v28, %v2418_v27 }
0x2c40   :  { %2424 = vst.msk [vmem:[#allocation17] sm:$0x3] %vm2423_vm7, %v2422_v29 }
0x2c41   :  { %3320 = shalt.err (!%p3317_p6)
}
0x2c42   :  { %s3925_s22 = sld [smem:[#allocation26_spill]] }
0x2c48   :  { %s3321_s23 = scalar_lea.hbm %s3925_s22, 32 }
0x2c49   :  { %p3322_p7 = scmp.ne.s32.totalorder %s3925_s22, %s3321_s23  ;;  %p3325_p8 = scmp.lt.u32.totalorder %s3321_s23, %s3925_s22 }
0x2c4b   :  { %p3327_p9 = pnand %p3325_p8, %p3322_p7 }
0x2c4d   :  { %3330 = shalt.err (!%p3327_p9)
}
0x2c4e   :  { %2434 = dma.vmem_to_hbm [thread:$0]  %s2432_s15, 32, %s3925_s22, [#allocation4]  }
0x2c4f   :  { %3341 = dma.done.wait [#allocation4], 32  }
0x2c50   :  { %3342 = vsyncadd [#allocation4], 4294967264 }
0x2c51   :  { %2438 = vsyncpa [#allocation3], 1 }
0x2c52   :  { %2439 = vsyncpa [#allocation6], 1 }
0x2c53   :  { %2440 = vsyncpa [#allocation9], 1 }
0x2c54   :  { %2441 = vsyncpa [#allocation12], 1 }
0x2c55   :  { %2442 = vsyncpa [#allocation15], 1 }
0x2c56   :  { %2443 = vsyncpa [#allocation4], 1 }

</bundles_post_ra>
